<compile_context>
chip_gen: v7x
topology: tpu7x:2x2x1
jax: 0.10.0
libtpu: 0.0.40
codegen_flags: <defaults>
</compile_context>

<pallas_src>
import functools

import jax
import jax.numpy as jnp
from jax import lax
from jax.experimental import pallas as pl
from jax.experimental.pallas import tpu as pltpu


# ----------------------------- Pallas kernel ------------------------------- #
def _bilstm_mlp_kernel(
    x2d_ref,          # (T*Bp, D)   time-major flattened input
    wih_f_ref,        # (D, 4H)     forward  W_ih^T
    whh_f_ref,        # (H, 4H)     forward  W_hh^T
    b_f_ref,          # (1, 4H)     forward  b_ih + b_hh
    wih_b_ref,        # (D, 4H)     reverse
    whh_b_ref,        # (H, 4H)
    b_b_ref,          # (1, 4H)
    fc1wf_ref,        # (H, H)      fc1 weight^T rows for the forward half
    fc1wb_ref,        # (H, H)      fc1 weight^T rows for the reverse half
    fc1b_ref,         # (1, H)
    fc2w_ref,         # (H, 2)      fc2 weight^T
    fc2b_ref,         # (1, 2)
    out_ref,          # (T*Bp, 2)
    hs_f,             # (T*Bp, H) scratch: forward hidden states
    hs_b,             # (T*Bp, H) scratch: reverse hidden states
    *, T, Bp, H,
):
    # ---- hoisted input projections: one dense matmul per direction, bias folded in
    x2d = x2d_ref[...]                                                   # (T*Bp, D)
    gx_f = jnp.dot(x2d, wih_f_ref[...], preferred_element_type=jnp.float32) + b_f_ref[...]
    gx_b = jnp.dot(x2d, wih_b_ref[...], preferred_element_type=jnp.float32) + b_b_ref[...]

    whh_f = whh_f_ref[...]
    whh_b = whh_b_ref[...]

    def gates_to_hc(gates, c_prev):
        # gates: (Bp, 4H), PyTorch gate order [i, f, g, o].
        # Full-width transcendentals (EUP), slice the 32-lane gate blocks after.
        sg = jax.nn.sigmoid(gates)
        tg = jnp.tanh(gates)
        i = sg[:, 0 * H:1 * H]
        f = sg[:, 1 * H:2 * H]
        g = tg[:, 2 * H:3 * H]
        o = sg[:, 3 * H:4 * H]
        c_new = f * c_prev + i * g
        h_new = o * jnp.tanh(c_new)
        return h_new, c_new

    zeros = jnp.zeros((Bp, H), jnp.float32)
    h_f, c_f = zeros, zeros
    h_b, c_b = zeros, zeros

    # ---- interleaved fwd/bwd recurrence, fully unrolled (T static & small)
    for t in range(T):
        tr = T - 1 - t
        g_f = gx_f[t * Bp:(t + 1) * Bp, :] + jnp.dot(
            h_f, whh_f, preferred_element_type=jnp.float32)
        g_b = gx_b[tr * Bp:(tr + 1) * Bp, :] + jnp.dot(
            h_b, whh_b, preferred_element_type=jnp.float32)
        h_f, c_f = gates_to_hc(g_f, c_f)
        h_b, c_b = gates_to_hc(g_b, c_b)
        hs_f[t * Bp:(t + 1) * Bp, :] = h_f
        hs_b[tr * Bp:(tr + 1) * Bp, :] = h_b

    # ---- flattened MLP head: relu -> fc1 -> relu -> fc2 -> sigmoid, one bulk store
    hf = jnp.maximum(hs_f[...], 0.0)                                     # (T*Bp, H)
    hb = jnp.maximum(hs_b[...], 0.0)
    z1 = (jnp.dot(hf, fc1wf_ref[...], preferred_element_type=jnp.float32)
          + jnp.dot(hb, fc1wb_ref[...], preferred_element_type=jnp.float32)
          + fc1b_ref[...])
    z1 = jnp.maximum(z1, 0.0)
    z2 = jnp.dot(z1, fc2w_ref[...], preferred_element_type=jnp.float32) + fc2b_ref[...]
    out_ref[...] = jax.nn.sigmoid(z2)


# ------------------------------ host wrapper -------------------------------- #
@jax.jit
def model_forward(x, params):
    """x: (B, T, D) float32 -> (B, T, 2) float32."""
    B, T, D = x.shape
    H = params["w_hh_f"].shape[1]

    # Pad batch to a multiple of 8 (f32 sublane tile) for dense matmuls.
    Bp = ((B + 7) // 8) * 8
    x_pad = jnp.pad(x, ((0, Bp - B), (0, 0), (0, 0)))
    x2d = jnp.transpose(x_pad, (1, 0, 2)).reshape(T * Bp, D)   # time-major, flattened

    fc1wt = params["fc1_w"].T                                  # (2H, H)

    args = (
        x2d,
        params["w_ih_f"].T,                                    # (D, 4H)
        params["w_hh_f"].T,                                    # (H, 4H)
        (params["b_ih_f"] + params["b_hh_f"])[None, :],        # (1, 4H)
        params["w_ih_b"].T,
        params["w_hh_b"].T,
        (params["b_ih_b"] + params["b_hh_b"])[None, :],
        fc1wt[:H],                                             # (H, H) fwd half
        fc1wt[H:],                                             # (H, H) bwd half
        params["fc1_b"][None, :],                              # (1, H)
        params["fc2_w"].T,                                     # (H, 2)
        params["fc2_b"][None, :],                              # (1, 2)
    )

    kernel = functools.partial(_bilstm_mlp_kernel, T=T, Bp=Bp, H=H)

    out = pl.pallas_call(
        kernel,
        out_shape=jax.ShapeDtypeStruct((T * Bp, 2), jnp.float32),
        in_specs=[pl.BlockSpec(memory_space=pltpu.MemorySpace.VMEM)] * len(args),
        out_specs=pl.BlockSpec(memory_space=pltpu.MemorySpace.VMEM),
        scratch_shapes=[
            pltpu.VMEM((T * Bp, H), jnp.float32),   # hs_f
            pltpu.VMEM((T * Bp, H), jnp.float32),   # hs_b
        ],
        compiler_params=pltpu.CompilerParams(vmem_limit_bytes=64 * 1024 * 1024),
    )(*args)

    out = out.reshape(T, Bp, 2)[:, :B, :]          # drop batch padding
    return jnp.transpose(out, (1, 0, 2))           # (B, T, 2)


# --------------------------- pure-JAX reference ----------------------------- #
def model_reference(x, params):
    B, T, D = x.shape
    H = params["w_hh_f"].shape[1]

    def run_dir(wih, whh, bih, bhh, xs):
        def step(carry, x_t):
            h, c = carry
            gates = x_t @ wih.T + h @ whh.T + bih + bhh
            i, f, g, o = jnp.split(gates, 4, axis=-1)
            i, f, o = jax.nn.sigmoid(i), jax.nn.sigmoid(f), jax.nn.sigmoid(o)
            g = jnp.tanh(g)
            c = f * c + i * g
            h = o * jnp.tanh(c)
            return (h, c), h

        init = (jnp.zeros((B, H), jnp.float32), jnp.zeros((B, H), jnp.float32))
        _, hs = lax.scan(step, init, xs)
        return hs  # (T, B, H)

    xt = jnp.transpose(x, (1, 0, 2))
    hf = run_dir(params["w_ih_f"], params["w_hh_f"], params["b_ih_f"], params["b_hh_f"], xt)
    hb = run_dir(params["w_ih_b"], params["w_hh_b"], params["b_ih_b"], params["b_hh_b"], xt[::-1])[::-1]
    h = jax.nn.relu(jnp.concatenate([hf, hb], axis=-1))
    z1 = jax.nn.relu(h @ params["fc1_w"].T + params["fc1_b"])
    z2 = z1 @ params["fc2_w"].T + params["fc2_b"]
    return jnp.transpose(jax.nn.sigmoid(z2), (1, 0, 2))


# ------------------------------ parameter init ------------------------------ #
def init_params(key, input_dim, hidden_size):
    H, D = hidden_size, input_dim
    k = 1.0 / jnp.sqrt(jnp.float32(H))
    names_shapes = [
        ("w_ih_f", (4 * H, D)), ("w_hh_f", (4 * H, H)),
        ("b_ih_f", (4 * H,)),   ("b_hh_f", (4 * H,)),
        ("w_ih_b", (4 * H, D)), ("w_hh_b", (4 * H, H)),
        ("b_ih_b", (4 * H,)),   ("b_hh_b", (4 * H,)),
        ("fc1_w", (H, 2 * H)),  ("fc1_b", (H,)),
        ("fc2_w", (2, H)),      ("fc2_b", (2,)),
    ]
    params = {}
    keys = jax.random.split(key, len(names_shapes))
    for (name, shape), kk in zip(names_shapes, keys):
        params[name] = jax.random.uniform(kk, shape, jnp.float32, -k, k)
    return params


if __name__ == "__main__":
    B, T, D, H = 2, 8, 4, 32

    key = jax.random.PRNGKey(0)
    kx, kp = jax.random.split(key)
    x = jax.random.normal(kx, (B, T, D), jnp.float32)
    params = init_params(kp, D, H)

    out = model_forward(x, params)
    out = jax.block_until_ready(out)

    ref = model_reference(x, params)
    assert out.shape == (B, T, 2), out.shape
    assert jnp.max(jnp.abs(out - ref)) < 1e-4, float(jnp.max(jnp.abs(out - ref)))

    # TODO(synk): on v7x the two directions could additionally be split across the
    # two TensorCores with a size-2 "parallel" grid axis; at these shapes the
    # interleaved single-core recurrence is already latency-optimal.
    print("KERNEL_OK")
</pallas_src>

<mosaic_0001>
module attributes {stable_mosaic.version = 11 : i64} {
  func.func @_bilstm_mlp_kernel(%arg0: memref<64x4xf32, #tpu.memory_space<vmem>>, %arg1: memref<4x128xf32, #tpu.memory_space<vmem>>, %arg2: memref<32x128xf32, #tpu.memory_space<vmem>>, %arg3: memref<1x128xf32, #tpu.memory_space<vmem>>, %arg4: memref<4x128xf32, #tpu.memory_space<vmem>>, %arg5: memref<32x128xf32, #tpu.memory_space<vmem>>, %arg6: memref<1x128xf32, #tpu.memory_space<vmem>>, %arg7: memref<32x32xf32, #tpu.memory_space<vmem>>, %arg8: memref<32x32xf32, #tpu.memory_space<vmem>>, %arg9: memref<1x32xf32, #tpu.memory_space<vmem>>, %arg10: memref<32x2xf32, #tpu.memory_space<vmem>>, %arg11: memref<1x2xf32, #tpu.memory_space<vmem>>, %arg12: memref<64x2xf32, #tpu.memory_space<vmem>>, %arg13: memref<64x32xf32, #tpu.memory_space<vmem>>, %arg14: memref<64x32xf32, #tpu.memory_space<vmem>>) attributes {dimension_semantics = [], scalar_prefetch = 0 : i64, scratch_operands = 2 : i64, tpu.core_type = #tpu.core_type<tc>} {
    %c0 = arith.constant 0 : index
    %c0_0 = arith.constant 0 : index
    %0 = vector.load %arg0[%c0, %c0_0] : memref<64x4xf32, #tpu.memory_space<vmem>>, vector<64x4xf32>
    %c0_1 = arith.constant 0 : index
    %c0_2 = arith.constant 0 : index
    %1 = vector.load %arg1[%c0_1, %c0_2] : memref<4x128xf32, #tpu.memory_space<vmem>>, vector<4x128xf32>
    %cst = arith.constant dense<0.000000e+00> : vector<64x128xf32>
    %2 = tpu.matmul %0, %1, %cst {dimension_numbers = #tpu.dot_dimension_numbers<[1], [0], [0], [1], [0, 0, 1, 1], [], []>} : vector<64x4xf32>, vector<4x128xf32>, vector<64x128xf32> -> vector<64x128xf32>
    %c0_3 = arith.constant 0 : index
    %c0_4 = arith.constant 0 : index
    %3 = vector.load %arg3[%c0_3, %c0_4] : memref<1x128xf32, #tpu.memory_space<vmem>>, vector<1x128xf32>
    %4 = vector.broadcast %3 : vector<1x128xf32> to vector<64x128xf32>
    %5 = arith.addf %2, %4 : vector<64x128xf32>
    %c0_5 = arith.constant 0 : index
    %c0_6 = arith.constant 0 : index
    %6 = vector.load %arg4[%c0_5, %c0_6] : memref<4x128xf32, #tpu.memory_space<vmem>>, vector<4x128xf32>
    %cst_7 = arith.constant dense<0.000000e+00> : vector<64x128xf32>
    %7 = tpu.matmul %0, %6, %cst_7 {dimension_numbers = #tpu.dot_dimension_numbers<[1], [0], [0], [1], [0, 0, 1, 1], [], []>} : vector<64x4xf32>, vector<4x128xf32>, vector<64x128xf32> -> vector<64x128xf32>
    %c0_8 = arith.constant 0 : index
    %c0_9 = arith.constant 0 : index
    %8 = vector.load %arg6[%c0_8, %c0_9] : memref<1x128xf32, #tpu.memory_space<vmem>>, vector<1x128xf32>
    %9 = vector.broadcast %8 : vector<1x128xf32> to vector<64x128xf32>
    %10 = arith.addf %7, %9 : vector<64x128xf32>
    %c0_10 = arith.constant 0 : index
    %c0_11 = arith.constant 0 : index
    %11 = vector.load %arg2[%c0_10, %c0_11] : memref<32x128xf32, #tpu.memory_space<vmem>>, vector<32x128xf32>
    %c0_12 = arith.constant 0 : index
    %c0_13 = arith.constant 0 : index
    %12 = vector.load %arg5[%c0_12, %c0_13] : memref<32x128xf32, #tpu.memory_space<vmem>>, vector<32x128xf32>
    %cst_14 = arith.constant 0.000000e+00 : f32
    %13 = vector.broadcast %cst_14 : f32 to vector<8x32xf32>
    %14 = vector.extract_strided_slice %5 {offsets = [0, 0], sizes = [8, 128], strides = [1, 1]} : vector<64x128xf32> to vector<8x128xf32>
    %cst_15 = arith.constant dense<0.000000e+00> : vector<8x128xf32>
    %15 = tpu.matmul %13, %11, %cst_15 {dimension_numbers = #tpu.dot_dimension_numbers<[1], [0], [0], [1], [0, 0, 1, 1], [], []>} : vector<8x32xf32>, vector<32x128xf32>, vector<8x128xf32> -> vector<8x128xf32>
    %16 = arith.addf %14, %15 : vector<8x128xf32>
    %17 = vector.extract_strided_slice %10 {offsets = [56, 0], sizes = [8, 128], strides = [1, 1]} : vector<64x128xf32> to vector<8x128xf32>
    %cst_16 = arith.constant dense<0.000000e+00> : vector<8x128xf32>
    %18 = tpu.matmul %13, %12, %cst_16 {dimension_numbers = #tpu.dot_dimension_numbers<[1], [0], [0], [1], [0, 0, 1, 1], [], []>} : vector<8x32xf32>, vector<32x128xf32>, vector<8x128xf32> -> vector<8x128xf32>
    %19 = arith.addf %17, %18 : vector<8x128xf32>
    %20 = arith.negf %16 : vector<8x128xf32>
    %21 = math.exp %20 : vector<8x128xf32>
    %cst_17 = arith.constant 1.000000e+00 : f32
    %22 = vector.broadcast %cst_17 : f32 to vector<8x128xf32>
    %23 = arith.addf %22, %21 : vector<8x128xf32>
    %24 = arith.divf %22, %23 : vector<8x128xf32>
    %25 = math.tanh %16 : vector<8x128xf32>
    %26 = vector.extract_strided_slice %24 {offsets = [0, 0], sizes = [8, 32], strides = [1, 1]} : vector<8x128xf32> to vector<8x32xf32>
    %27 = vector.extract_strided_slice %24 {offsets = [0, 32], sizes = [8, 32], strides = [1, 1]} : vector<8x128xf32> to vector<8x32xf32>
    %28 = vector.extract_strided_slice %25 {offsets = [0, 64], sizes = [8, 32], strides = [1, 1]} : vector<8x128xf32> to vector<8x32xf32>
    %29 = vector.extract_strided_slice %24 {offsets = [0, 96], sizes = [8, 32], strides = [1, 1]} : vector<8x128xf32> to vector<8x32xf32>
    %30 = arith.mulf %27, %13 : vector<8x32xf32>
    %31 = arith.mulf %26, %28 : vector<8x32xf32>
    %32 = arith.addf %30, %31 : vector<8x32xf32>
    %33 = math.tanh %32 : vector<8x32xf32>
    %34 = arith.mulf %29, %33 : vector<8x32xf32>
    %35 = arith.negf %19 : vector<8x128xf32>
    %36 = math.exp %35 : vector<8x128xf32>
    %cst_18 = arith.constant 1.000000e+00 : f32
    %37 = vector.broadcast %cst_18 : f32 to vector<8x128xf32>
    %38 = arith.addf %37, %36 : vector<8x128xf32>
    %39 = arith.divf %37, %38 : vector<8x128xf32>
    %40 = math.tanh %19 : vector<8x128xf32>
    %41 = vector.extract_strided_slice %39 {offsets = [0, 0], sizes = [8, 32], strides = [1, 1]} : vector<8x128xf32> to vector<8x32xf32>
    %42 = vector.extract_strided_slice %39 {offsets = [0, 32], sizes = [8, 32], strides = [1, 1]} : vector<8x128xf32> to vector<8x32xf32>
    %43 = vector.extract_strided_slice %40 {offsets = [0, 64], sizes = [8, 32], strides = [1, 1]} : vector<8x128xf32> to vector<8x32xf32>
    %44 = vector.extract_strided_slice %39 {offsets = [0, 96], sizes = [8, 32], strides = [1, 1]} : vector<8x128xf32> to vector<8x32xf32>
    %45 = arith.mulf %42, %13 : vector<8x32xf32>
    %46 = arith.mulf %41, %43 : vector<8x32xf32>
    %47 = arith.addf %45, %46 : vector<8x32xf32>
    %48 = math.tanh %47 : vector<8x32xf32>
    %49 = arith.mulf %44, %48 : vector<8x32xf32>
    %c0_19 = arith.constant 0 : index
    %c0_20 = arith.constant 0 : index
    %50 = vector.load %arg13[%c0_19, %c0_20] : memref<64x32xf32, #tpu.memory_space<vmem>>, vector<8x32xf32>
    tpu.vector_store %arg13[%c0_19, %c0_20], %34 {strides = array<i32>} : memref<64x32xf32, #tpu.memory_space<vmem>>, vector<8x32xf32>,
    %c56 = arith.constant 56 : index
    %c0_21 = arith.constant 0 : index
    %51 = vector.load %arg14[%c56, %c0_21] : memref<64x32xf32, #tpu.memory_space<vmem>>, vector<8x32xf32>
    tpu.vector_store %arg14[%c56, %c0_21], %49 {strides = array<i32>} : memref<64x32xf32, #tpu.memory_space<vmem>>, vector<8x32xf32>,
    %52 = vector.extract_strided_slice %5 {offsets = [8, 0], sizes = [8, 128], strides = [1, 1]} : vector<64x128xf32> to vector<8x128xf32>
    %cst_22 = arith.constant dense<0.000000e+00> : vector<8x128xf32>
    %53 = tpu.matmul %34, %11, %cst_22 {dimension_numbers = #tpu.dot_dimension_numbers<[1], [0], [0], [1], [0, 0, 1, 1], [], []>} : vector<8x32xf32>, vector<32x128xf32>, vector<8x128xf32> -> vector<8x128xf32>
    %54 = arith.addf %52, %53 : vector<8x128xf32>
    %55 = vector.extract_strided_slice %10 {offsets = [48, 0], sizes = [8, 128], strides = [1, 1]} : vector<64x128xf32> to vector<8x128xf32>
    %cst_23 = arith.constant dense<0.000000e+00> : vector<8x128xf32>
    %56 = tpu.matmul %49, %12, %cst_23 {dimension_numbers = #tpu.dot_dimension_numbers<[1], [0], [0], [1], [0, 0, 1, 1], [], []>} : vector<8x32xf32>, vector<32x128xf32>, vector<8x128xf32> -> vector<8x128xf32>
    %57 = arith.addf %55, %56 : vector<8x128xf32>
    %58 = arith.negf %54 : vector<8x128xf32>
    %59 = math.exp %58 : vector<8x128xf32>
    %cst_24 = arith.constant 1.000000e+00 : f32
    %60 = vector.broadcast %cst_24 : f32 to vector<8x128xf32>
    %61 = arith.addf %60, %59 : vector<8x128xf32>
    %62 = arith.divf %60, %61 : vector<8x128xf32>
    %63 = math.tanh %54 : vector<8x128xf32>
    %64 = vector.extract_strided_slice %62 {offsets = [0, 0], sizes = [8, 32], strides = [1, 1]} : vector<8x128xf32> to vector<8x32xf32>
    %65 = vector.extract_strided_slice %62 {offsets = [0, 32], sizes = [8, 32], strides = [1, 1]} : vector<8x128xf32> to vector<8x32xf32>
    %66 = vector.extract_strided_slice %63 {offsets = [0, 64], sizes = [8, 32], strides = [1, 1]} : vector<8x128xf32> to vector<8x32xf32>
    %67 = vector.extract_strided_slice %62 {offsets = [0, 96], sizes = [8, 32], strides = [1, 1]} : vector<8x128xf32> to vector<8x32xf32>
    %68 = arith.mulf %65, %32 : vector<8x32xf32>
    %69 = arith.mulf %64, %66 : vector<8x32xf32>
    %70 = arith.addf %68, %69 : vector<8x32xf32>
    %71 = math.tanh %70 : vector<8x32xf32>
    %72 = arith.mulf %67, %71 : vector<8x32xf32>
    %73 = arith.negf %57 : vector<8x128xf32>
    %74 = math.exp %73 : vector<8x128xf32>
    %cst_25 = arith.constant 1.000000e+00 : f32
    %75 = vector.broadcast %cst_25 : f32 to vector<8x128xf32>
    %76 = arith.addf %75, %74 : vector<8x128xf32>
    %77 = arith.divf %75, %76 : vector<8x128xf32>
    %78 = math.tanh %57 : vector<8x128xf32>
    %79 = vector.extract_strided_slice %77 {offsets = [0, 0], sizes = [8, 32], strides = [1, 1]} : vector<8x128xf32> to vector<8x32xf32>
    %80 = vector.extract_strided_slice %77 {offsets = [0, 32], sizes = [8, 32], strides = [1, 1]} : vector<8x128xf32> to vector<8x32xf32>
    %81 = vector.extract_strided_slice %78 {offsets = [0, 64], sizes = [8, 32], strides = [1, 1]} : vector<8x128xf32> to vector<8x32xf32>
    %82 = vector.extract_strided_slice %77 {offsets = [0, 96], sizes = [8, 32], strides = [1, 1]} : vector<8x128xf32> to vector<8x32xf32>
    %83 = arith.mulf %80, %47 : vector<8x32xf32>
    %84 = arith.mulf %79, %81 : vector<8x32xf32>
    %85 = arith.addf %83, %84 : vector<8x32xf32>
    %86 = math.tanh %85 : vector<8x32xf32>
    %87 = arith.mulf %82, %86 : vector<8x32xf32>
    %c8 = arith.constant 8 : index
    %c0_26 = arith.constant 0 : index
    %88 = vector.load %arg13[%c8, %c0_26] : memref<64x32xf32, #tpu.memory_space<vmem>>, vector<8x32xf32>
    tpu.vector_store %arg13[%c8, %c0_26], %72 {strides = array<i32>} : memref<64x32xf32, #tpu.memory_space<vmem>>, vector<8x32xf32>,
    %c48 = arith.constant 48 : index
    %c0_27 = arith.constant 0 : index
    %89 = vector.load %arg14[%c48, %c0_27] : memref<64x32xf32, #tpu.memory_space<vmem>>, vector<8x32xf32>
    tpu.vector_store %arg14[%c48, %c0_27], %87 {strides = array<i32>} : memref<64x32xf32, #tpu.memory_space<vmem>>, vector<8x32xf32>,
    %90 = vector.extract_strided_slice %5 {offsets = [16, 0], sizes = [8, 128], strides = [1, 1]} : vector<64x128xf32> to vector<8x128xf32>
    %cst_28 = arith.constant dense<0.000000e+00> : vector<8x128xf32>
    %91 = tpu.matmul %72, %11, %cst_28 {dimension_numbers = #tpu.dot_dimension_numbers<[1], [0], [0], [1], [0, 0, 1, 1], [], []>} : vector<8x32xf32>, vector<32x128xf32>, vector<8x128xf32> -> vector<8x128xf32>
    %92 = arith.addf %90, %91 : vector<8x128xf32>
    %93 = vector.extract_strided_slice %10 {offsets = [40, 0], sizes = [8, 128], strides = [1, 1]} : vector<64x128xf32> to vector<8x128xf32>
    %cst_29 = arith.constant dense<0.000000e+00> : vector<8x128xf32>
    %94 = tpu.matmul %87, %12, %cst_29 {dimension_numbers = #tpu.dot_dimension_numbers<[1], [0], [0], [1], [0, 0, 1, 1], [], []>} : vector<8x32xf32>, vector<32x128xf32>, vector<8x128xf32> -> vector<8x128xf32>
    %95 = arith.addf %93, %94 : vector<8x128xf32>
    %96 = arith.negf %92 : vector<8x128xf32>
    %97 = math.exp %96 : vector<8x128xf32>
    %cst_30 = arith.constant 1.000000e+00 : f32
    %98 = vector.broadcast %cst_30 : f32 to vector<8x128xf32>
    %99 = arith.addf %98, %97 : vector<8x128xf32>
    %100 = arith.divf %98, %99 : vector<8x128xf32>
    %101 = math.tanh %92 : vector<8x128xf32>
    %102 = vector.extract_strided_slice %100 {offsets = [0, 0], sizes = [8, 32], strides = [1, 1]} : vector<8x128xf32> to vector<8x32xf32>
    %103 = vector.extract_strided_slice %100 {offsets = [0, 32], sizes = [8, 32], strides = [1, 1]} : vector<8x128xf32> to vector<8x32xf32>
    %104 = vector.extract_strided_slice %101 {offsets = [0, 64], sizes = [8, 32], strides = [1, 1]} : vector<8x128xf32> to vector<8x32xf32>
    %105 = vector.extract_strided_slice %100 {offsets = [0, 96], sizes = [8, 32], strides = [1, 1]} : vector<8x128xf32> to vector<8x32xf32>
    %106 = arith.mulf %103, %70 : vector<8x32xf32>
    %107 = arith.mulf %102, %104 : vector<8x32xf32>
    %108 = arith.addf %106, %107 : vector<8x32xf32>
    %109 = math.tanh %108 : vector<8x32xf32>
    %110 = arith.mulf %105, %109 : vector<8x32xf32>
    %111 = arith.negf %95 : vector<8x128xf32>
    %112 = math.exp %111 : vector<8x128xf32>
    %cst_31 = arith.constant 1.000000e+00 : f32
    %113 = vector.broadcast %cst_31 : f32 to vector<8x128xf32>
    %114 = arith.addf %113, %112 : vector<8x128xf32>
    %115 = arith.divf %113, %114 : vector<8x128xf32>
    %116 = math.tanh %95 : vector<8x128xf32>
    %117 = vector.extract_strided_slice %115 {offsets = [0, 0], sizes = [8, 32], strides = [1, 1]} : vector<8x128xf32> to vector<8x32xf32>
    %118 = vector.extract_strided_slice %115 {offsets = [0, 32], sizes = [8, 32], strides = [1, 1]} : vector<8x128xf32> to vector<8x32xf32>
    %119 = vector.extract_strided_slice %116 {offsets = [0, 64], sizes = [8, 32], strides = [1, 1]} : vector<8x128xf32> to vector<8x32xf32>
    %120 = vector.extract_strided_slice %115 {offsets = [0, 96], sizes = [8, 32], strides = [1, 1]} : vector<8x128xf32> to vector<8x32xf32>
    %121 = arith.mulf %118, %85 : vector<8x32xf32>
    %122 = arith.mulf %117, %119 : vector<8x32xf32>
    %123 = arith.addf %121, %122 : vector<8x32xf32>
    %124 = math.tanh %123 : vector<8x32xf32>
    %125 = arith.mulf %120, %124 : vector<8x32xf32>
    %c16 = arith.constant 16 : index
    %c0_32 = arith.constant 0 : index
    %126 = vector.load %arg13[%c16, %c0_32] : memref<64x32xf32, #tpu.memory_space<vmem>>, vector<8x32xf32>
    tpu.vector_store %arg13[%c16, %c0_32], %110 {strides = array<i32>} : memref<64x32xf32, #tpu.memory_space<vmem>>, vector<8x32xf32>,
    %c40 = arith.constant 40 : index
    %c0_33 = arith.constant 0 : index
    %127 = vector.load %arg14[%c40, %c0_33] : memref<64x32xf32, #tpu.memory_space<vmem>>, vector<8x32xf32>
    tpu.vector_store %arg14[%c40, %c0_33], %125 {strides = array<i32>} : memref<64x32xf32, #tpu.memory_space<vmem>>, vector<8x32xf32>,
    %128 = vector.extract_strided_slice %5 {offsets = [24, 0], sizes = [8, 128], strides = [1, 1]} : vector<64x128xf32> to vector<8x128xf32>
    %cst_34 = arith.constant dense<0.000000e+00> : vector<8x128xf32>
    %129 = tpu.matmul %110, %11, %cst_34 {dimension_numbers = #tpu.dot_dimension_numbers<[1], [0], [0], [1], [0, 0, 1, 1], [], []>} : vector<8x32xf32>, vector<32x128xf32>, vector<8x128xf32> -> vector<8x128xf32>
    %130 = arith.addf %128, %129 : vector<8x128xf32>
    %131 = vector.extract_strided_slice %10 {offsets = [32, 0], sizes = [8, 128], strides = [1, 1]} : vector<64x128xf32> to vector<8x128xf32>
    %cst_35 = arith.constant dense<0.000000e+00> : vector<8x128xf32>
    %132 = tpu.matmul %125, %12, %cst_35 {dimension_numbers = #tpu.dot_dimension_numbers<[1], [0], [0], [1], [0, 0, 1, 1], [], []>} : vector<8x32xf32>, vector<32x128xf32>, vector<8x128xf32> -> vector<8x128xf32>
    %133 = arith.addf %131, %132 : vector<8x128xf32>
    %134 = arith.negf %130 : vector<8x128xf32>
    %135 = math.exp %134 : vector<8x128xf32>
    %cst_36 = arith.constant 1.000000e+00 : f32
    %136 = vector.broadcast %cst_36 : f32 to vector<8x128xf32>
    %137 = arith.addf %136, %135 : vector<8x128xf32>
    %138 = arith.divf %136, %137 : vector<8x128xf32>
    %139 = math.tanh %130 : vector<8x128xf32>
    %140 = vector.extract_strided_slice %138 {offsets = [0, 0], sizes = [8, 32], strides = [1, 1]} : vector<8x128xf32> to vector<8x32xf32>
    %141 = vector.extract_strided_slice %138 {offsets = [0, 32], sizes = [8, 32], strides = [1, 1]} : vector<8x128xf32> to vector<8x32xf32>
    %142 = vector.extract_strided_slice %139 {offsets = [0, 64], sizes = [8, 32], strides = [1, 1]} : vector<8x128xf32> to vector<8x32xf32>
    %143 = vector.extract_strided_slice %138 {offsets = [0, 96], sizes = [8, 32], strides = [1, 1]} : vector<8x128xf32> to vector<8x32xf32>
    %144 = arith.mulf %141, %108 : vector<8x32xf32>
    %145 = arith.mulf %140, %142 : vector<8x32xf32>
    %146 = arith.addf %144, %145 : vector<8x32xf32>
    %147 = math.tanh %146 : vector<8x32xf32>
    %148 = arith.mulf %143, %147 : vector<8x32xf32>
    %149 = arith.negf %133 : vector<8x128xf32>
    %150 = math.exp %149 : vector<8x128xf32>
    %cst_37 = arith.constant 1.000000e+00 : f32
    %151 = vector.broadcast %cst_37 : f32 to vector<8x128xf32>
    %152 = arith.addf %151, %150 : vector<8x128xf32>
    %153 = arith.divf %151, %152 : vector<8x128xf32>
    %154 = math.tanh %133 : vector<8x128xf32>
    %155 = vector.extract_strided_slice %153 {offsets = [0, 0], sizes = [8, 32], strides = [1, 1]} : vector<8x128xf32> to vector<8x32xf32>
    %156 = vector.extract_strided_slice %153 {offsets = [0, 32], sizes = [8, 32], strides = [1, 1]} : vector<8x128xf32> to vector<8x32xf32>
    %157 = vector.extract_strided_slice %154 {offsets = [0, 64], sizes = [8, 32], strides = [1, 1]} : vector<8x128xf32> to vector<8x32xf32>
    %158 = vector.extract_strided_slice %153 {offsets = [0, 96], sizes = [8, 32], strides = [1, 1]} : vector<8x128xf32> to vector<8x32xf32>
    %159 = arith.mulf %156, %123 : vector<8x32xf32>
    %160 = arith.mulf %155, %157 : vector<8x32xf32>
    %161 = arith.addf %159, %160 : vector<8x32xf32>
    %162 = math.tanh %161 : vector<8x32xf32>
    %163 = arith.mulf %158, %162 : vector<8x32xf32>
    %c24 = arith.constant 24 : index
    %c0_38 = arith.constant 0 : index
    %164 = vector.load %arg13[%c24, %c0_38] : memref<64x32xf32, #tpu.memory_space<vmem>>, vector<8x32xf32>
    tpu.vector_store %arg13[%c24, %c0_38], %148 {strides = array<i32>} : memref<64x32xf32, #tpu.memory_space<vmem>>, vector<8x32xf32>,
    %c32 = arith.constant 32 : index
    %c0_39 = arith.constant 0 : index
    %165 = vector.load %arg14[%c32, %c0_39] : memref<64x32xf32, #tpu.memory_space<vmem>>, vector<8x32xf32>
    tpu.vector_store %arg14[%c32, %c0_39], %163 {strides = array<i32>} : memref<64x32xf32, #tpu.memory_space<vmem>>, vector<8x32xf32>,
    %166 = vector.extract_strided_slice %5 {offsets = [32, 0], sizes = [8, 128], strides = [1, 1]} : vector<64x128xf32> to vector<8x128xf32>
    %cst_40 = arith.constant dense<0.000000e+00> : vector<8x128xf32>
    %167 = tpu.matmul %148, %11, %cst_40 {dimension_numbers = #tpu.dot_dimension_numbers<[1], [0], [0], [1], [0, 0, 1, 1], [], []>} : vector<8x32xf32>, vector<32x128xf32>, vector<8x128xf32> -> vector<8x128xf32>
    %168 = arith.addf %166, %167 : vector<8x128xf32>
    %169 = vector.extract_strided_slice %10 {offsets = [24, 0], sizes = [8, 128], strides = [1, 1]} : vector<64x128xf32> to vector<8x128xf32>
    %cst_41 = arith.constant dense<0.000000e+00> : vector<8x128xf32>
    %170 = tpu.matmul %163, %12, %cst_41 {dimension_numbers = #tpu.dot_dimension_numbers<[1], [0], [0], [1], [0, 0, 1, 1], [], []>} : vector<8x32xf32>, vector<32x128xf32>, vector<8x128xf32> -> vector<8x128xf32>
    %171 = arith.addf %169, %170 : vector<8x128xf32>
    %172 = arith.negf %168 : vector<8x128xf32>
    %173 = math.exp %172 : vector<8x128xf32>
    %cst_42 = arith.constant 1.000000e+00 : f32
    %174 = vector.broadcast %cst_42 : f32 to vector<8x128xf32>
    %175 = arith.addf %174, %173 : vector<8x128xf32>
    %176 = arith.divf %174, %175 : vector<8x128xf32>
    %177 = math.tanh %168 : vector<8x128xf32>
    %178 = vector.extract_strided_slice %176 {offsets = [0, 0], sizes = [8, 32], strides = [1, 1]} : vector<8x128xf32> to vector<8x32xf32>
    %179 = vector.extract_strided_slice %176 {offsets = [0, 32], sizes = [8, 32], strides = [1, 1]} : vector<8x128xf32> to vector<8x32xf32>
    %180 = vector.extract_strided_slice %177 {offsets = [0, 64], sizes = [8, 32], strides = [1, 1]} : vector<8x128xf32> to vector<8x32xf32>
    %181 = vector.extract_strided_slice %176 {offsets = [0, 96], sizes = [8, 32], strides = [1, 1]} : vector<8x128xf32> to vector<8x32xf32>
    %182 = arith.mulf %179, %146 : vector<8x32xf32>
    %183 = arith.mulf %178, %180 : vector<8x32xf32>
    %184 = arith.addf %182, %183 : vector<8x32xf32>
    %185 = math.tanh %184 : vector<8x32xf32>
    %186 = arith.mulf %181, %185 : vector<8x32xf32>
    %187 = arith.negf %171 : vector<8x128xf32>
    %188 = math.exp %187 : vector<8x128xf32>
    %cst_43 = arith.constant 1.000000e+00 : f32
    %189 = vector.broadcast %cst_43 : f32 to vector<8x128xf32>
    %190 = arith.addf %189, %188 : vector<8x128xf32>
    %191 = arith.divf %189, %190 : vector<8x128xf32>
    %192 = math.tanh %171 : vector<8x128xf32>
    %193 = vector.extract_strided_slice %191 {offsets = [0, 0], sizes = [8, 32], strides = [1, 1]} : vector<8x128xf32> to vector<8x32xf32>
    %194 = vector.extract_strided_slice %191 {offsets = [0, 32], sizes = [8, 32], strides = [1, 1]} : vector<8x128xf32> to vector<8x32xf32>
    %195 = vector.extract_strided_slice %192 {offsets = [0, 64], sizes = [8, 32], strides = [1, 1]} : vector<8x128xf32> to vector<8x32xf32>
    %196 = vector.extract_strided_slice %191 {offsets = [0, 96], sizes = [8, 32], strides = [1, 1]} : vector<8x128xf32> to vector<8x32xf32>
    %197 = arith.mulf %194, %161 : vector<8x32xf32>
    %198 = arith.mulf %193, %195 : vector<8x32xf32>
    %199 = arith.addf %197, %198 : vector<8x32xf32>
    %200 = math.tanh %199 : vector<8x32xf32>
    %201 = arith.mulf %196, %200 : vector<8x32xf32>
    %c32_44 = arith.constant 32 : index
    %c0_45 = arith.constant 0 : index
    %202 = vector.load %arg13[%c32_44, %c0_45] : memref<64x32xf32, #tpu.memory_space<vmem>>, vector<8x32xf32>
    tpu.vector_store %arg13[%c32_44, %c0_45], %186 {strides = array<i32>} : memref<64x32xf32, #tpu.memory_space<vmem>>, vector<8x32xf32>,
    %c24_46 = arith.constant 24 : index
    %c0_47 = arith.constant 0 : index
    %203 = vector.load %arg14[%c24_46, %c0_47] : memref<64x32xf32, #tpu.memory_space<vmem>>, vector<8x32xf32>
    tpu.vector_store %arg14[%c24_46, %c0_47], %201 {strides = array<i32>} : memref<64x32xf32, #tpu.memory_space<vmem>>, vector<8x32xf32>,
    %204 = vector.extract_strided_slice %5 {offsets = [40, 0], sizes = [8, 128], strides = [1, 1]} : vector<64x128xf32> to vector<8x128xf32>
    %cst_48 = arith.constant dense<0.000000e+00> : vector<8x128xf32>
    %205 = tpu.matmul %186, %11, %cst_48 {dimension_numbers = #tpu.dot_dimension_numbers<[1], [0], [0], [1], [0, 0, 1, 1], [], []>} : vector<8x32xf32>, vector<32x128xf32>, vector<8x128xf32> -> vector<8x128xf32>
    %206 = arith.addf %204, %205 : vector<8x128xf32>
    %207 = vector.extract_strided_slice %10 {offsets = [16, 0], sizes = [8, 128], strides = [1, 1]} : vector<64x128xf32> to vector<8x128xf32>
    %cst_49 = arith.constant dense<0.000000e+00> : vector<8x128xf32>
    %208 = tpu.matmul %201, %12, %cst_49 {dimension_numbers = #tpu.dot_dimension_numbers<[1], [0], [0], [1], [0, 0, 1, 1], [], []>} : vector<8x32xf32>, vector<32x128xf32>, vector<8x128xf32> -> vector<8x128xf32>
    %209 = arith.addf %207, %208 : vector<8x128xf32>
    %210 = arith.negf %206 : vector<8x128xf32>
    %211 = math.exp %210 : vector<8x128xf32>
    %cst_50 = arith.constant 1.000000e+00 : f32
    %212 = vector.broadcast %cst_50 : f32 to vector<8x128xf32>
    %213 = arith.addf %212, %211 : vector<8x128xf32>
    %214 = arith.divf %212, %213 : vector<8x128xf32>
    %215 = math.tanh %206 : vector<8x128xf32>
    %216 = vector.extract_strided_slice %214 {offsets = [0, 0], sizes = [8, 32], strides = [1, 1]} : vector<8x128xf32> to vector<8x32xf32>
    %217 = vector.extract_strided_slice %214 {offsets = [0, 32], sizes = [8, 32], strides = [1, 1]} : vector<8x128xf32> to vector<8x32xf32>
    %218 = vector.extract_strided_slice %215 {offsets = [0, 64], sizes = [8, 32], strides = [1, 1]} : vector<8x128xf32> to vector<8x32xf32>
    %219 = vector.extract_strided_slice %214 {offsets = [0, 96], sizes = [8, 32], strides = [1, 1]} : vector<8x128xf32> to vector<8x32xf32>
    %220 = arith.mulf %217, %184 : vector<8x32xf32>
    %221 = arith.mulf %216, %218 : vector<8x32xf32>
    %222 = arith.addf %220, %221 : vector<8x32xf32>
    %223 = math.tanh %222 : vector<8x32xf32>
    %224 = arith.mulf %219, %223 : vector<8x32xf32>
    %225 = arith.negf %209 : vector<8x128xf32>
    %226 = math.exp %225 : vector<8x128xf32>
    %cst_51 = arith.constant 1.000000e+00 : f32
    %227 = vector.broadcast %cst_51 : f32 to vector<8x128xf32>
    %228 = arith.addf %227, %226 : vector<8x128xf32>
    %229 = arith.divf %227, %228 : vector<8x128xf32>
    %230 = math.tanh %209 : vector<8x128xf32>
    %231 = vector.extract_strided_slice %229 {offsets = [0, 0], sizes = [8, 32], strides = [1, 1]} : vector<8x128xf32> to vector<8x32xf32>
    %232 = vector.extract_strided_slice %229 {offsets = [0, 32], sizes = [8, 32], strides = [1, 1]} : vector<8x128xf32> to vector<8x32xf32>
    %233 = vector.extract_strided_slice %230 {offsets = [0, 64], sizes = [8, 32], strides = [1, 1]} : vector<8x128xf32> to vector<8x32xf32>
    %234 = vector.extract_strided_slice %229 {offsets = [0, 96], sizes = [8, 32], strides = [1, 1]} : vector<8x128xf32> to vector<8x32xf32>
    %235 = arith.mulf %232, %199 : vector<8x32xf32>
    %236 = arith.mulf %231, %233 : vector<8x32xf32>
    %237 = arith.addf %235, %236 : vector<8x32xf32>
    %238 = math.tanh %237 : vector<8x32xf32>
    %239 = arith.mulf %234, %238 : vector<8x32xf32>
    %c40_52 = arith.constant 40 : index
    %c0_53 = arith.constant 0 : index
    %240 = vector.load %arg13[%c40_52, %c0_53] : memref<64x32xf32, #tpu.memory_space<vmem>>, vector<8x32xf32>
    tpu.vector_store %arg13[%c40_52, %c0_53], %224 {strides = array<i32>} : memref<64x32xf32, #tpu.memory_space<vmem>>, vector<8x32xf32>,
    %c16_54 = arith.constant 16 : index
    %c0_55 = arith.constant 0 : index
    %241 = vector.load %arg14[%c16_54, %c0_55] : memref<64x32xf32, #tpu.memory_space<vmem>>, vector<8x32xf32>
    tpu.vector_store %arg14[%c16_54, %c0_55], %239 {strides = array<i32>} : memref<64x32xf32, #tpu.memory_space<vmem>>, vector<8x32xf32>,
    %242 = vector.extract_strided_slice %5 {offsets = [48, 0], sizes = [8, 128], strides = [1, 1]} : vector<64x128xf32> to vector<8x128xf32>
    %cst_56 = arith.constant dense<0.000000e+00> : vector<8x128xf32>
    %243 = tpu.matmul %224, %11, %cst_56 {dimension_numbers = #tpu.dot_dimension_numbers<[1], [0], [0], [1], [0, 0, 1, 1], [], []>} : vector<8x32xf32>, vector<32x128xf32>, vector<8x128xf32> -> vector<8x128xf32>
    %244 = arith.addf %242, %243 : vector<8x128xf32>
    %245 = vector.extract_strided_slice %10 {offsets = [8, 0], sizes = [8, 128], strides = [1, 1]} : vector<64x128xf32> to vector<8x128xf32>
    %cst_57 = arith.constant dense<0.000000e+00> : vector<8x128xf32>
    %246 = tpu.matmul %239, %12, %cst_57 {dimension_numbers = #tpu.dot_dimension_numbers<[1], [0], [0], [1], [0, 0, 1, 1], [], []>} : vector<8x32xf32>, vector<32x128xf32>, vector<8x128xf32> -> vector<8x128xf32>
    %247 = arith.addf %245, %246 : vector<8x128xf32>
    %248 = arith.negf %244 : vector<8x128xf32>
    %249 = math.exp %248 : vector<8x128xf32>
    %cst_58 = arith.constant 1.000000e+00 : f32
    %250 = vector.broadcast %cst_58 : f32 to vector<8x128xf32>
    %251 = arith.addf %250, %249 : vector<8x128xf32>
    %252 = arith.divf %250, %251 : vector<8x128xf32>
    %253 = math.tanh %244 : vector<8x128xf32>
    %254 = vector.extract_strided_slice %252 {offsets = [0, 0], sizes = [8, 32], strides = [1, 1]} : vector<8x128xf32> to vector<8x32xf32>
    %255 = vector.extract_strided_slice %252 {offsets = [0, 32], sizes = [8, 32], strides = [1, 1]} : vector<8x128xf32> to vector<8x32xf32>
    %256 = vector.extract_strided_slice %253 {offsets = [0, 64], sizes = [8, 32], strides = [1, 1]} : vector<8x128xf32> to vector<8x32xf32>
    %257 = vector.extract_strided_slice %252 {offsets = [0, 96], sizes = [8, 32], strides = [1, 1]} : vector<8x128xf32> to vector<8x32xf32>
    %258 = arith.mulf %255, %222 : vector<8x32xf32>
    %259 = arith.mulf %254, %256 : vector<8x32xf32>
    %260 = arith.addf %258, %259 : vector<8x32xf32>
    %261 = math.tanh %260 : vector<8x32xf32>
    %262 = arith.mulf %257, %261 : vector<8x32xf32>
    %263 = arith.negf %247 : vector<8x128xf32>
    %264 = math.exp %263 : vector<8x128xf32>
    %cst_59 = arith.constant 1.000000e+00 : f32
    %265 = vector.broadcast %cst_59 : f32 to vector<8x128xf32>
    %266 = arith.addf %265, %264 : vector<8x128xf32>
    %267 = arith.divf %265, %266 : vector<8x128xf32>
    %268 = math.tanh %247 : vector<8x128xf32>
    %269 = vector.extract_strided_slice %267 {offsets = [0, 0], sizes = [8, 32], strides = [1, 1]} : vector<8x128xf32> to vector<8x32xf32>
    %270 = vector.extract_strided_slice %267 {offsets = [0, 32], sizes = [8, 32], strides = [1, 1]} : vector<8x128xf32> to vector<8x32xf32>
    %271 = vector.extract_strided_slice %268 {offsets = [0, 64], sizes = [8, 32], strides = [1, 1]} : vector<8x128xf32> to vector<8x32xf32>
    %272 = vector.extract_strided_slice %267 {offsets = [0, 96], sizes = [8, 32], strides = [1, 1]} : vector<8x128xf32> to vector<8x32xf32>
    %273 = arith.mulf %270, %237 : vector<8x32xf32>
    %274 = arith.mulf %269, %271 : vector<8x32xf32>
    %275 = arith.addf %273, %274 : vector<8x32xf32>
    %276 = math.tanh %275 : vector<8x32xf32>
    %277 = arith.mulf %272, %276 : vector<8x32xf32>
    %c48_60 = arith.constant 48 : index
    %c0_61 = arith.constant 0 : index
    %278 = vector.load %arg13[%c48_60, %c0_61] : memref<64x32xf32, #tpu.memory_space<vmem>>, vector<8x32xf32>
    tpu.vector_store %arg13[%c48_60, %c0_61], %262 {strides = array<i32>} : memref<64x32xf32, #tpu.memory_space<vmem>>, vector<8x32xf32>,
    %c8_62 = arith.constant 8 : index
    %c0_63 = arith.constant 0 : index
    %279 = vector.load %arg14[%c8_62, %c0_63] : memref<64x32xf32, #tpu.memory_space<vmem>>, vector<8x32xf32>
    tpu.vector_store %arg14[%c8_62, %c0_63], %277 {strides = array<i32>} : memref<64x32xf32, #tpu.memory_space<vmem>>, vector<8x32xf32>,
    %280 = vector.extract_strided_slice %5 {offsets = [56, 0], sizes = [8, 128], strides = [1, 1]} : vector<64x128xf32> to vector<8x128xf32>
    %cst_64 = arith.constant dense<0.000000e+00> : vector<8x128xf32>
    %281 = tpu.matmul %262, %11, %cst_64 {dimension_numbers = #tpu.dot_dimension_numbers<[1], [0], [0], [1], [0, 0, 1, 1], [], []>} : vector<8x32xf32>, vector<32x128xf32>, vector<8x128xf32> -> vector<8x128xf32>
    %282 = arith.addf %280, %281 : vector<8x128xf32>
    %283 = vector.extract_strided_slice %10 {offsets = [0, 0], sizes = [8, 128], strides = [1, 1]} : vector<64x128xf32> to vector<8x128xf32>
    %cst_65 = arith.constant dense<0.000000e+00> : vector<8x128xf32>
    %284 = tpu.matmul %277, %12, %cst_65 {dimension_numbers = #tpu.dot_dimension_numbers<[1], [0], [0], [1], [0, 0, 1, 1], [], []>} : vector<8x32xf32>, vector<32x128xf32>, vector<8x128xf32> -> vector<8x128xf32>
    %285 = arith.addf %283, %284 : vector<8x128xf32>
    %286 = arith.negf %282 : vector<8x128xf32>
    %287 = math.exp %286 : vector<8x128xf32>
    %cst_66 = arith.constant 1.000000e+00 : f32
    %288 = vector.broadcast %cst_66 : f32 to vector<8x128xf32>
    %289 = arith.addf %288, %287 : vector<8x128xf32>
    %290 = arith.divf %288, %289 : vector<8x128xf32>
    %291 = math.tanh %282 : vector<8x128xf32>
    %292 = vector.extract_strided_slice %290 {offsets = [0, 0], sizes = [8, 32], strides = [1, 1]} : vector<8x128xf32> to vector<8x32xf32>
    %293 = vector.extract_strided_slice %290 {offsets = [0, 32], sizes = [8, 32], strides = [1, 1]} : vector<8x128xf32> to vector<8x32xf32>
    %294 = vector.extract_strided_slice %291 {offsets = [0, 64], sizes = [8, 32], strides = [1, 1]} : vector<8x128xf32> to vector<8x32xf32>
    %295 = vector.extract_strided_slice %290 {offsets = [0, 96], sizes = [8, 32], strides = [1, 1]} : vector<8x128xf32> to vector<8x32xf32>
    %296 = arith.mulf %293, %260 : vector<8x32xf32>
    %297 = arith.mulf %292, %294 : vector<8x32xf32>
    %298 = arith.addf %296, %297 : vector<8x32xf32>
    %299 = math.tanh %298 : vector<8x32xf32>
    %300 = arith.mulf %295, %299 : vector<8x32xf32>
    %301 = arith.negf %285 : vector<8x128xf32>
    %302 = math.exp %301 : vector<8x128xf32>
    %cst_67 = arith.constant 1.000000e+00 : f32
    %303 = vector.broadcast %cst_67 : f32 to vector<8x128xf32>
    %304 = arith.addf %303, %302 : vector<8x128xf32>
    %305 = arith.divf %303, %304 : vector<8x128xf32>
    %306 = math.tanh %285 : vector<8x128xf32>
    %307 = vector.extract_strided_slice %305 {offsets = [0, 0], sizes = [8, 32], strides = [1, 1]} : vector<8x128xf32> to vector<8x32xf32>
    %308 = vector.extract_strided_slice %305 {offsets = [0, 32], sizes = [8, 32], strides = [1, 1]} : vector<8x128xf32> to vector<8x32xf32>
    %309 = vector.extract_strided_slice %306 {offsets = [0, 64], sizes = [8, 32], strides = [1, 1]} : vector<8x128xf32> to vector<8x32xf32>
    %310 = vector.extract_strided_slice %305 {offsets = [0, 96], sizes = [8, 32], strides = [1, 1]} : vector<8x128xf32> to vector<8x32xf32>
    %311 = arith.mulf %308, %275 : vector<8x32xf32>
    %312 = arith.mulf %307, %309 : vector<8x32xf32>
    %313 = arith.addf %311, %312 : vector<8x32xf32>
    %314 = math.tanh %313 : vector<8x32xf32>
    %315 = arith.mulf %310, %314 : vector<8x32xf32>
    %c56_68 = arith.constant 56 : index
    %c0_69 = arith.constant 0 : index
    %316 = vector.load %arg13[%c56_68, %c0_69] : memref<64x32xf32, #tpu.memory_space<vmem>>, vector<8x32xf32>
    tpu.vector_store %arg13[%c56_68, %c0_69], %300 {strides = array<i32>} : memref<64x32xf32, #tpu.memory_space<vmem>>, vector<8x32xf32>,
    %c0_70 = arith.constant 0 : index
    %c0_71 = arith.constant 0 : index
    %317 = vector.load %arg14[%c0_70, %c0_71] : memref<64x32xf32, #tpu.memory_space<vmem>>, vector<8x32xf32>
    tpu.vector_store %arg14[%c0_70, %c0_71], %315 {strides = array<i32>} : memref<64x32xf32, #tpu.memory_space<vmem>>, vector<8x32xf32>,
    %c0_72 = arith.constant 0 : index
    %c0_73 = arith.constant 0 : index
    %318 = vector.load %arg13[%c0_72, %c0_73] : memref<64x32xf32, #tpu.memory_space<vmem>>, vector<64x32xf32>
    %cst_74 = arith.constant 0.000000e+00 : f32
    %319 = vector.broadcast %cst_74 : f32 to vector<64x32xf32>
    %320 = arith.maximumf %318, %319 : vector<64x32xf32>
    %c0_75 = arith.constant 0 : index
    %c0_76 = arith.constant 0 : index
    %321 = vector.load %arg14[%c0_75, %c0_76] : memref<64x32xf32, #tpu.memory_space<vmem>>, vector<64x32xf32>
    %cst_77 = arith.constant 0.000000e+00 : f32
    %322 = vector.broadcast %cst_77 : f32 to vector<64x32xf32>
    %323 = arith.maximumf %321, %322 : vector<64x32xf32>
    %c0_78 = arith.constant 0 : index
    %c0_79 = arith.constant 0 : index
    %324 = vector.load %arg7[%c0_78, %c0_79] : memref<32x32xf32, #tpu.memory_space<vmem>>, vector<32x32xf32>
    %cst_80 = arith.constant dense<0.000000e+00> : vector<64x32xf32>
    %325 = tpu.matmul %320, %324, %cst_80 {dimension_numbers = #tpu.dot_dimension_numbers<[1], [0], [0], [1], [0, 0, 1, 1], [], []>} : vector<64x32xf32>, vector<32x32xf32>, vector<64x32xf32> -> vector<64x32xf32>
    %c0_81 = arith.constant 0 : index
    %c0_82 = arith.constant 0 : index
    %326 = vector.load %arg8[%c0_81, %c0_82] : memref<32x32xf32, #tpu.memory_space<vmem>>, vector<32x32xf32>
    %cst_83 = arith.constant dense<0.000000e+00> : vector<64x32xf32>
    %327 = tpu.matmul %323, %326, %cst_83 {dimension_numbers = #tpu.dot_dimension_numbers<[1], [0], [0], [1], [0, 0, 1, 1], [], []>} : vector<64x32xf32>, vector<32x32xf32>, vector<64x32xf32> -> vector<64x32xf32>
    %328 = arith.addf %325, %327 : vector<64x32xf32>
    %c0_84 = arith.constant 0 : index
    %c0_85 = arith.constant 0 : index
    %329 = vector.load %arg9[%c0_84, %c0_85] : memref<1x32xf32, #tpu.memory_space<vmem>>, vector<1x32xf32>
    %330 = vector.broadcast %329 : vector<1x32xf32> to vector<64x32xf32>
    %331 = arith.addf %328, %330 : vector<64x32xf32>
    %cst_86 = arith.constant 0.000000e+00 : f32
    %332 = vector.broadcast %cst_86 : f32 to vector<64x32xf32>
    %333 = arith.maximumf %331, %332 : vector<64x32xf32>
    %c0_87 = arith.constant 0 : index
    %c0_88 = arith.constant 0 : index
    %334 = vector.load %arg10[%c0_87, %c0_88] : memref<32x2xf32, #tpu.memory_space<vmem>>, vector<32x2xf32>
    %cst_89 = arith.constant dense<0.000000e+00> : vector<64x2xf32>
    %335 = tpu.matmul %333, %334, %cst_89 {dimension_numbers = #tpu.dot_dimension_numbers<[1], [0], [0], [1], [0, 0, 1, 1], [], []>} : vector<64x32xf32>, vector<32x2xf32>, vector<64x2xf32> -> vector<64x2xf32>
    %c0_90 = arith.constant 0 : index
    %c0_91 = arith.constant 0 : index
    %336 = vector.load %arg11[%c0_90, %c0_91] : memref<1x2xf32, #tpu.memory_space<vmem>>, vector<1x2xf32>
    %337 = vector.broadcast %336 : vector<1x2xf32> to vector<64x2xf32>
    %338 = arith.addf %335, %337 : vector<64x2xf32>
    %339 = arith.negf %338 : vector<64x2xf32>
    %340 = math.exp %339 : vector<64x2xf32>
    %cst_92 = arith.constant 1.000000e+00 : f32
    %341 = vector.broadcast %cst_92 : f32 to vector<64x2xf32>
    %342 = arith.addf %341, %340 : vector<64x2xf32>
    %343 = arith.divf %341, %342 : vector<64x2xf32>
    %c0_93 = arith.constant 0 : index
    %c0_94 = arith.constant 0 : index
    %344 = vector.load %arg12[%c0_93, %c0_94] : memref<64x2xf32, #tpu.memory_space<vmem>>, vector<64x2xf32>
    tpu.vector_store %arg12[%c0_93, %c0_94], %343 {strides = array<i32>} : memref<64x2xf32, #tpu.memory_space<vmem>>, vector<64x2xf32>,
    return
  }
}

</mosaic_0001>

<bundles_post_ra>
// kernel: model_forward.1
= control target key start
LH: loop header
LB: loop body
LE: loop exit
PB: predicated region body
PF: predicated region fallthrough
CT: control target
= control target key end

     0   :  { %17 = vsyncpa [#allocation5], 0  ;;  %s4321_s0 = inlined_call_operand.hbm [shape: f32[64,4], index: 0, kind: input, shape index: {}]   ;;  %s4322_s1 = inlined_call_operand.hbm [shape: f32[4,128], index: 1, kind: input, shape index: {}]   ;;  %s4323_s2 = inlined_call_operand.hbm [shape: f32[32,128], index: 2, kind: input, shape index: {}]   ;;  %s4324_s3 = inlined_call_operand.hbm [shape: f32[1,128], index: 3, kind: input, shape index: {}]   ;;  %s4325_s4 = inlined_call_operand.hbm [shape: f32[4,128], index: 4, kind: input, shape index: {}]   ;;  %s4326_s5 = inlined_call_operand.hbm [shape: f32[32,128], index: 5, kind: input, shape index: {}]   ;;  %s4327_s6 = inlined_call_operand.hbm [shape: f32[1,128], index: 6, kind: input, shape index: {}]   ;;  %s4328_s7 = inlined_call_operand.hbm [shape: f32[32,32], index: 7, kind: input, shape index: {}]   ;;  %s4329_s8 = inlined_call_operand.hbm [shape: f32[32,32], index: 8, kind: input, shape index: {}]   ;;  %s4330_s9 = inlined_call_operand.hbm [shape: f32[1,32], index: 9, kind: input, shape index: {}]   ;;  %s4331_s10 = inlined_call_operand.hbm [shape: f32[32,2], index: 10, kind: input, shape index: {}]   ;;  %s4332_s11 = inlined_call_operand.hbm [shape: f32[1,2], index: 11, kind: input, shape index: {}]   ;;  %s4333_s12 = inlined_call_operand.hbm [shape: f32[64,2], index: 12, kind: output, shape index: {}]  }
   0x1   :  { %18 = vsyncpa [#allocation8], 0 }
   0x2   :  { %19 = vsyncpa [#allocation11], 0 }
   0x3   :  { %20 = vsyncpa [#allocation14], 0 }
   0x4   :  { %21 = vsyncpa [#allocation17], 0 }
   0x5   :  { %22 = vsyncpa [#allocation20], 0 }
   0x6   :  { %23 = vsyncpa [#allocation23], 0 }
   0x7   :  { %24 = vsyncpa [#allocation6], 0  ;;  %s3734_s21 = smov [#allocation7]   ;;  %s3735_s23 = smov [#allocation10]  }
   0x8   :  { %s43_s22 = sshll.u32 %s3734_s21, 4  ;;  %s65_s24 = sshll.u32 %s3735_s23, 4  ;;  %s44_s22 = int_to_ptr.vmem [resolvable:$true] %s43_s22  ;;  %s66_s24 = int_to_ptr.vmem [resolvable:$true] %s65_s24 }
   0x9   :  { %s3432_s27 = scalar_lea.hbm %s4322_s1, 64 }
   0xa   :  { %p3433_p0 = scmp.ne.s32.totalorder %s4322_s1, %s3432_s27  ;;  %p3436_p1 = scmp.lt.u32.totalorder %s3432_s27, %s4322_s1 }
   0xc   :  { %p3438_p2 = pnand %p3436_p1, %p3433_p0 }
   0xe   :  { %3441 = shalt.err (!%p3438_p2)
}
   0xf   :  { %s3442_s14 = scalar_lea.vmem %s44_s22, 64  ;;  %p3447_p4 = scmp.lt.s32.totalorder %s44_s22, %s44_s22 }
  0x10   :  { %p3443_p3 = scmp.ne.s32.totalorder %s44_s22, %s3442_s14  ;;  %p3448_p5 = scmp.lt.s32.totalorder %s3442_s14, %s3442_s14 }
  0x12   :  { %p3449_p6 = por %p3448_p5, %p3447_p4 }
  0x14   :  { %p3450_p7 = pnand %p3449_p6, %p3443_p3 }
  0x16   :  { %3453 = shalt.err (!%p3450_p7)
}
  0x17   :  { %46 = dma.hbm_to_vmem [thread:$0]  %s4322_s1, 64, %s44_s22, [#allocation8]  }
  0x18   :  { %s3454_s19 = scalar_lea.hbm %s4324_s3, 16 }
  0x19   :  { %p3455_p8 = scmp.ne.s32.totalorder %s4324_s3, %s3454_s19  ;;  %p3458_p9 = scmp.lt.u32.totalorder %s3454_s19, %s4324_s3 }
  0x1b   :  { %p3460_p10 = pnand %p3458_p9, %p3455_p8 }
  0x1d   :  { %3463 = shalt.err (!%p3460_p10)
}
  0x1e   :  { %s3464_s26 = scalar_lea.vmem %s66_s24, 16  ;;  %s3468_s27 = scalar_lea.vmem %s66_s24, 32 }
  0x1f   :  { %p3465_p11 = scmp.ne.s32.totalorder %s66_s24, %s3464_s26  ;;  %p3469_p12 = scmp.lt.s32.totalorder %s66_s24, %s66_s24 }
  0x20   :  { %p3470_p13 = scmp.lt.s32.totalorder %s3468_s27, %s3464_s26 }
  0x22   :  { %p3471_p0 = por %p3470_p13, %p3469_p12 }
  0x24   :  { %p3472_p1 = pnand %p3471_p0, %p3465_p11 }
  0x26   :  { %3475 = shalt.err (!%p3472_p1)
}
  0x27   :  { %68 = dma.hbm_to_vmem [thread:$0]  %s4324_s3, 16, %s66_s24, [#allocation11]  }
  0x28   :  { %s3736_s28 = smov [#allocation13]   ;;  %s3737_s30 = smov [#allocation16]  }
  0x29   :  { %s84_s29 = sshll.u32 %s3736_s28, 4  ;;  %s106_s13 = sshll.u32 %s3737_s30, 4  ;;  %s85_s29 = int_to_ptr.vmem [resolvable:$true] %s84_s29  ;;  %s3843_s13 = int_to_ptr.vmem [resolvable:$true] %s106_s13 }
  0x2a   :  { %s3476_s16 = scalar_lea.hbm %s4326_s5, 512 }
  0x2b   :  { %p3477_p2 = scmp.ne.s32.totalorder %s4326_s5, %s3476_s16  ;;  %p3480_p3 = scmp.lt.u32.totalorder %s3476_s16, %s4326_s5 }
  0x2d   :  { %p3482_p4 = pnand %p3480_p3, %p3477_p2 }
  0x2f   :  { %3485 = shalt.err (!%p3482_p4)
}
  0x30   :  { %s3486_s3 = scalar_lea.vmem %s85_s29, 512  ;;  %p3491_p6 = scmp.lt.s32.totalorder %s85_s29, %s85_s29 }
  0x31   :  { %p3487_p5 = scmp.ne.s32.totalorder %s85_s29, %s3486_s3  ;;  %p3492_p7 = scmp.lt.s32.totalorder %s3486_s3, %s3486_s3 }
  0x33   :  { %p3493_p8 = por %p3492_p7, %p3491_p6 }
  0x35   :  { %p3494_p9 = pnand %p3493_p8, %p3487_p5 }
  0x37   :  { %3497 = shalt.err (!%p3494_p9)
}
  0x38   :  { %s3738_s24 = smov 128   ;;  %s3739_s21 = smov 8  }
  0x39   :  { %90 = dma.hbm_to_vmem [thread:$0]  %s4326_s5, 512, %s85_s29, [#allocation14], %s3738_s24, %s3738_s24, %s3739_s21  }
  0x3a   :  { %s3498_s1 = scalar_lea.hbm %s4328_s7, 512 }
  0x3b   :  { %p3499_p10 = scmp.ne.s32.totalorder %s4328_s7, %s3498_s1  ;;  %p3502_p11 = scmp.lt.u32.totalorder %s3498_s1, %s4328_s7 }
  0x3d   :  { %p3504_p12 = pnand %p3502_p11, %p3499_p10 }
  0x3f   :  { %3507 = shalt.err (!%p3504_p12)
}
  0x40   :  { %s3508_s15 = scalar_lea.vmem %s3843_s13, 512  ;;  %p3513_p0 = scmp.lt.s32.totalorder %s3843_s13, %s3843_s13 }
  0x41   :  { %p3509_p13 = scmp.ne.s32.totalorder %s3843_s13, %s3508_s15  ;;  %p3514_p1 = scmp.lt.s32.totalorder %s3508_s15, %s3508_s15 }
  0x43   :  { %p3515_p2 = por %p3514_p1, %p3513_p0 }
  0x45   :  { %p3516_p3 = pnand %p3515_p2, %p3509_p13 }
  0x47   :  { %3519 = shalt.err (!%p3516_p3)
}
  0x48   :  { %112 = dma.hbm_to_vmem [thread:$0]  %s4328_s7, 512, %s3843_s13, [#allocation17], %s3738_s24, %s3738_s24, %s3739_s21  }
  0x49   :  { %s3740_s16 = smov [#allocation19]   ;;  %s3741_s18 = smov [#allocation4]  }
  0x4a   :  { %s131_s17 = sshll.u32 %s3740_s16, 4  ;;  %s30_s19 = sshll.u32 %s3741_s18, 4  ;;  %s132_s17 = int_to_ptr.vmem [resolvable:$true] %s131_s17  ;;  %s3880_s19 = int_to_ptr.vmem [resolvable:$true] %s30_s19 }
  0x4b   :  { %s3520_s23 = scalar_lea.hbm %s4330_s9, 16 }
  0x4c   :  { %p3521_p4 = scmp.ne.s32.totalorder %s4330_s9, %s3520_s23  ;;  %p3524_p5 = scmp.lt.u32.totalorder %s3520_s23, %s4330_s9 }
  0x4e   :  { %p3526_p6 = pnand %p3524_p5, %p3521_p4 }
  0x50   :  { %3529 = shalt.err (!%p3526_p6)
}
  0x51   :  { %s3530_s7 = scalar_lea.vmem %s132_s17, 16  ;;  %s3534_s13 = scalar_lea.vmem %s132_s17, 32 }
  0x52   :  { %p3531_p7 = scmp.ne.s32.totalorder %s132_s17, %s3530_s7  ;;  %p3535_p8 = scmp.lt.s32.totalorder %s132_s17, %s132_s17 }
  0x53   :  { %p3536_p9 = scmp.lt.s32.totalorder %s3534_s13, %s3530_s7 }
  0x55   :  { %p3537_p10 = por %p3536_p9, %p3535_p8 }
  0x57   :  { %p3538_p11 = pnand %p3537_p10, %p3531_p7 }
  0x59   :  { %3541 = shalt.err (!%p3538_p11)
}
  0x5a   :  { %134 = dma.hbm_to_vmem [thread:$0]  %s4330_s9, 16, %s132_s17, [#allocation20]  }
  0x5b   :  { %s3542_s15 = scalar_lea.hbm %s4321_s0, 1024 }
  0x5c   :  { %p3543_p12 = scmp.ne.s32.totalorder %s4321_s0, %s3542_s15  ;;  %p3546_p13 = scmp.lt.u32.totalorder %s3542_s15, %s4321_s0 }
  0x5e   :  { %p3548_p0 = pnand %p3546_p13, %p3543_p12 }
  0x60   :  { %3551 = shalt.err (!%p3548_p0)
}
  0x61   :  { %s3552_s20 = scalar_lea.vmem %s3880_s19, 1024  ;;  %p3557_p2 = scmp.lt.s32.totalorder %s3880_s19, %s3880_s19 }
  0x62   :  { %p3553_p1 = scmp.ne.s32.totalorder %s3880_s19, %s3552_s20  ;;  %p3558_p3 = scmp.lt.s32.totalorder %s3552_s20, %s3552_s20 }
  0x64   :  { %p3559_p4 = por %p3558_p3, %p3557_p2 }
  0x66   :  { %p3560_p5 = pnand %p3559_p4, %p3553_p1 }
  0x68   :  { %3563 = shalt.err (!%p3560_p5)
}
  0x69   :  { %36 = dma.hbm_to_vmem [thread:$0]  %s4321_s0, 1024, %s3880_s19, [#allocation5], %s3738_s24, %s3738_s24, %s3739_s21  }
  0x6a   :  { %s3742_s3 = smov [#allocation9]   ;;  %s3743_s25 = smov [#allocation12]  }
  0x6b   :  { %s52_s23 = sshll.u32 %s3742_s3, 4  ;;  %s75_s26 = sshll.u32 %s3743_s25, 4  ;;  %s53_s23 = int_to_ptr.vmem [resolvable:$true] %s52_s23  ;;  %s76_s26 = int_to_ptr.vmem [resolvable:$true] %s75_s26 }
  0x6c   :  { %s3564_s7 = scalar_lea.hbm %s4323_s2, 512 }
  0x6d   :  { %p3565_p6 = scmp.ne.s32.totalorder %s4323_s2, %s3564_s7  ;;  %p3568_p7 = scmp.lt.u32.totalorder %s3564_s7, %s4323_s2 }
  0x6f   :  { %p3570_p8 = pnand %p3568_p7, %p3565_p6 }
  0x71   :  { %3573 = shalt.err (!%p3570_p8)
}
  0x72   :  { %s3574_s0 = scalar_lea.vmem %s53_s23, 512  ;;  %p3579_p10 = scmp.lt.s32.totalorder %s53_s23, %s53_s23 }
  0x73   :  { %p3575_p9 = scmp.ne.s32.totalorder %s53_s23, %s3574_s0  ;;  %p3580_p11 = scmp.lt.s32.totalorder %s3574_s0, %s3574_s0 }
  0x75   :  { %p3581_p12 = por %p3580_p11, %p3579_p10 }
  0x77   :  { %p3582_p13 = pnand %p3581_p12, %p3575_p9 }
  0x79   :  { %3585 = shalt.err (!%p3582_p13)
}
  0x7a   :  { %58 = dma.hbm_to_vmem [thread:$0]  %s4323_s2, 512, %s53_s23, [#allocation8], %s3738_s24, %s3738_s24, %s3739_s21  }
  0x7b   :  { %s3586_s29 = scalar_lea.hbm %s4325_s4, 64 }
  0x7c   :  { %p3587_p0 = scmp.ne.s32.totalorder %s4325_s4, %s3586_s29  ;;  %p3590_p1 = scmp.lt.u32.totalorder %s3586_s29, %s4325_s4 }
  0x7e   :  { %p3592_p2 = pnand %p3590_p1, %p3587_p0 }
  0x80   :  { %3595 = shalt.err (!%p3592_p2)
}
  0x81   :  { %s3596_s17 = scalar_lea.vmem %s76_s26, 64  ;;  %p3601_p4 = scmp.lt.s32.totalorder %s76_s26, %s76_s26 }
  0x82   :  { %p3597_p3 = scmp.ne.s32.totalorder %s76_s26, %s3596_s17  ;;  %p3602_p5 = scmp.lt.s32.totalorder %s3596_s17, %s3596_s17 }
  0x84   :  { %p3603_p6 = por %p3602_p5, %p3601_p4 }
  0x86   :  { %p3604_p7 = pnand %p3603_p6, %p3597_p3 }
  0x88   :  { %3607 = shalt.err (!%p3604_p7)
}
  0x89   :  { %78 = dma.hbm_to_vmem [thread:$0]  %s4325_s4, 64, %s76_s26, [#allocation11]  }
  0x8a   :  { %s3744_s23 = smov [#allocation15]   ;;  %s3745_s27 = smov [#allocation18]  }
  0x8b   :  { %s97_s25 = sshll.u32 %s3744_s23, 4  ;;  %s118_s1 = sshll.u32 %s3745_s27, 4  ;;  %s98_s25 = int_to_ptr.vmem [resolvable:$true] %s97_s25  ;;  %s3941_s1 = int_to_ptr.vmem [resolvable:$true] %s118_s1 }
  0x8c   :  { %s3608_s22 = scalar_lea.hbm %s4327_s6, 16 }
  0x8d   :  { %p3609_p8 = scmp.ne.s32.totalorder %s4327_s6, %s3608_s22  ;;  %p3612_p9 = scmp.lt.u32.totalorder %s3608_s22, %s4327_s6 }
  0x8f   :  { %p3614_p10 = pnand %p3612_p9, %p3609_p8 }
  0x91   :  { %3617 = shalt.err (!%p3614_p10)
}
  0x92   :  { %s3618_s4 = scalar_lea.vmem %s98_s25, 16  ;;  %s3622_s26 = scalar_lea.vmem %s98_s25, 32 }
  0x93   :  { %p3619_p11 = scmp.ne.s32.totalorder %s98_s25, %s3618_s4  ;;  %p3623_p12 = scmp.lt.s32.totalorder %s98_s25, %s98_s25 }
  0x94   :  { %p3624_p13 = scmp.lt.s32.totalorder %s3622_s26, %s3618_s4 }
  0x96   :  { %p3625_p0 = por %p3624_p13, %p3623_p12 }
  0x98   :  { %p3626_p1 = pnand %p3625_p0, %p3619_p11 }
  0x9a   :  { %3629 = shalt.err (!%p3626_p1)
}
  0x9b   :  { %100 = dma.hbm_to_vmem [thread:$0]  %s4327_s6, 16, %s98_s25, [#allocation14]  }
  0x9c   :  { %s3630_s16 = scalar_lea.hbm %s4329_s8, 512 }
  0x9d   :  { %p3631_p2 = scmp.ne.s32.totalorder %s4329_s8, %s3630_s16  ;;  %p3634_p3 = scmp.lt.u32.totalorder %s3630_s16, %s4329_s8 }
  0x9f   :  { %p3636_p4 = pnand %p3634_p3, %p3631_p2 }
  0xa1   :  { %3639 = shalt.err (!%p3636_p4)
}
  0xa2   :  { %s3640_s2 = scalar_lea.vmem %s3941_s1, 512  ;;  %p3645_p6 = scmp.lt.s32.totalorder %s3941_s1, %s3941_s1 }
  0xa3   :  { %p3641_p5 = scmp.ne.s32.totalorder %s3941_s1, %s3640_s2  ;;  %p3646_p7 = scmp.lt.s32.totalorder %s3640_s2, %s3640_s2 }
  0xa5   :  { %p3647_p8 = por %p3646_p7, %p3645_p6 }
  0xa7   :  { %p3648_p9 = pnand %p3647_p8, %p3641_p5 }
  0xa9   :  { %3651 = shalt.err (!%p3648_p9)
}
  0xaa   :  { %124 = dma.hbm_to_vmem [thread:$0]  %s4329_s8, 512, %s3941_s1, [#allocation17], %s3738_s24, %s3738_s24, %s3739_s21  }
  0xab   :  { %s3746_s23 = smov [#allocation21]   ;;  %s3747_s27 = smov [#allocation22]  }
  0xac   :  { %s140_s25 = sshll.u32 %s3746_s23, 4  ;;  %s153_s7 = sshll.u32 %s3747_s27, 4  ;;  %s141_s25 = int_to_ptr.vmem [resolvable:$true] %s140_s25  ;;  %s154_s7 = int_to_ptr.vmem [resolvable:$true] %s153_s7 }
  0xad   :  { %s3652_s28 = scalar_lea.hbm %s4331_s10, 512 }
  0xae   :  { %p3653_p10 = scmp.ne.s32.totalorder %s4331_s10, %s3652_s28  ;;  %p3656_p11 = scmp.lt.u32.totalorder %s3652_s28, %s4331_s10 }
  0xb0   :  { %p3658_p12 = pnand %p3656_p11, %p3653_p10 }
  0xb2   :  { %3661 = shalt.err (!%p3658_p12)
}
  0xb3   :  { %s3662_s8 = scalar_lea.vmem %s141_s25, 512  ;;  %p3667_p0 = scmp.lt.s32.totalorder %s141_s25, %s141_s25 }
  0xb4   :  { %p3663_p13 = scmp.ne.s32.totalorder %s141_s25, %s3662_s8  ;;  %p3668_p1 = scmp.lt.s32.totalorder %s3662_s8, %s3662_s8 }
  0xb6   :  { %p3669_p2 = por %p3668_p1, %p3667_p0 }
  0xb8   :  { %p3670_p3 = pnand %p3669_p2, %p3663_p13 }
  0xba   :  { %3673 = shalt.err (!%p3670_p3)
}
  0xbb   :  { %146 = dma.hbm_to_vmem [thread:$0]  %s4331_s10, 512, %s141_s25, [#allocation20], %s3738_s24, %s3738_s24, %s3739_s21  }
  0xbc   :  { %s3674_s5 = scalar_lea.hbm %s4332_s11, 16 }
  0xbd   :  { %p3675_p4 = scmp.ne.s32.totalorder %s4332_s11, %s3674_s5  ;;  %p3678_p5 = scmp.lt.u32.totalorder %s3674_s5, %s4332_s11 }
  0xbf   :  { %p3680_p6 = pnand %p3678_p5, %p3675_p4 }
  0xc1   :  { %3683 = shalt.err (!%p3680_p6)
}
  0xc2   :  { %s3684_s9 = scalar_lea.vmem %s154_s7, 16  ;;  %s3688_s17 = scalar_lea.vmem %s154_s7, 32 }
  0xc3   :  { %p3685_p7 = scmp.ne.s32.totalorder %s154_s7, %s3684_s9  ;;  %p3689_p8 = scmp.lt.s32.totalorder %s154_s7, %s154_s7 }
  0xc4   :  { %p3690_p9 = scmp.lt.s32.totalorder %s3688_s17, %s3684_s9 }
  0xc6   :  { %p3691_p10 = por %p3690_p9, %p3689_p8 }
  0xc8   :  { %p3692_p11 = pnand %p3691_p10, %p3685_p7 }
  0xca   :  { %3695 = shalt.err (!%p3692_p11)
}
  0xcb   :  { %156 = dma.hbm_to_vmem [thread:$0]  %s4332_s11, 16, %s154_s7, [#allocation23]  }
  0xcc   :  { %3718 = dma.done.wait [#allocation5], 1024  }
  0xcd   :  { %3719 = vsyncadd [#allocation5], 4294966272 }
  0xce   :  { %3720 = dma.done.wait [#allocation8], 576  }
  0xcf   :  { %3721 = vsyncadd [#allocation8], 4294966720 }
  0xd0   :  { %3722 = dma.done.wait [#allocation11], 80  }
  0xd1   :  { %3723 = vsyncadd [#allocation11], 4294967216 }
  0xd2   :  { %3724 = dma.done.wait [#allocation14], 528  }
  0xd3   :  { %3725 = vsyncadd [#allocation14], 4294966768 }
  0xd4   :  { %3726 = dma.done.wait [#allocation17], 1024  }
  0xd5   :  { %3727 = vsyncadd [#allocation17], 4294966272 }
  0xd6   :  { %3728 = dma.done.wait [#allocation20], 528  }
  0xd7   :  { %3729 = vsyncadd [#allocation20], 4294966768 }
  0xd8   :  { %3730 = dma.done.wait [#allocation23], 16  }
  0xd9   :  { %3731 = vsyncadd [#allocation23], 4294967280  ;;  %vm234_vm0 = vcmask 1043456   ;;  %vm209_vm1 = vcmask 31744   ;;  %v201_v0 = vld [vmem:[#allocation7] sm:$0xf] }
  0xda   :  { %v197_v1 = vld [vmem:[#allocation4 + $0x20] sm:$0xff]  ;;  %v198_v2 = vld [vmem:[#allocation4 + $0x28] sm:$0xff]  ;;  %3242 = vmatprep.subr.msk.mxu1 %vm234_vm0, %v201_v0  ;;  %v199_v4 = vld [vmem:[#allocation4 + $0x30] sm:$0xff]  ;;  %2858 = vmatprep.subr.msk.mxu0 %vm234_vm0, %v201_v0  ;;  %v3748_v8 = vmov 0.0|0.0   ;;  %vm3749_vm2 = vmmov 0   ;;  %v3750_v23 = vmov 0.0  }
  0xdb   :  { %2866 = vmatprep.mubr.msk.f32.mxu1 %vm209_vm1, %v197_v1  ;;  %v343_v3 = vld [vmem:[#allocation12] sm:$0xf]  ;;  %3243 = vmatpush3.msk.msra.mxu1 %vm234_vm0, %v201_v0  ;;  %v200_v5 = vld [vmem:[#allocation4 + $0x38] sm:$0xff]  ;;  %v463_v9 = vld [vmem:[#allocation13] sm:$0xff]  ;;  %s3751_s11 = smov 64   ;;  %s3752_s6 = smov 32  }
  0xdc   :  { %2867 = vmatmul.mubr.msk.f32.vlgmr.msra.gmra.mrb[0].mxu1 %vm209_vm1, %v198_v2  ;;  %2872 = vmatprep.subr.msk.mxu1 %vm234_vm0, %v343_v3  ;;  %v193_v6 = vld [vmem:[#allocation4] sm:$0xff]  ;;  %v464_v10 = vld [vmem:[#allocation13 + $0x8] sm:$0xff]  ;;  %v194_v12 = vld [vmem:[#allocation4 + $0x8] sm:$0xff]  ;;  %vm467_vm3 = vcmask 261120   ;;  %vm2608_vm4 = vcmask 15360   ;;  %s3753_s3 = smov [#allocation24]  }
  0xdd   :  { %2873 = vmatpush3.msk.msra.mxu1 %vm234_vm0, %v343_v3  ;;  %2869 = vmatprep.mubr.msk.f32.mxu1 %vm209_vm1, %v199_v4  ;;  %v459_v7 = vld [vmem:[#allocation9] sm:$0xff]  ;;  %v460_v11 = vld [vmem:[#allocation9 + $0x8] sm:$0xff]  ;;  %v461_v14 = vld [vmem:[#allocation9 + $0x10] sm:$0xff]  ;;  %v4019_v16 = vpack.c.bf16 %v464_v10, %v463_v9  ;;  %s2622_s23 = sshll.u32 %s3753_s3, 4  ;;  %s2623_s23 = int_to_ptr.vmem [resolvable:$true] %s2622_s23 }
  0xde   :  { %3128 = vmatprep.subr.bf16.mxu1 %v3748_v8  ;;  %2859 = vmatpush3.msk.msra.mxu0 %vm234_vm0, %v201_v0  ;;  %v4014_v13 = vpack.c.bf16 %v460_v11, %v459_v7  ;;  %v462_v15 = vld [vmem:[#allocation9 + $0x18] sm:$0xff]  ;;  %v195_v17 = vld [vmem:[#allocation4 + $0x10] sm:$0xff]  ;;  %v2640_v24 = vld [vmem:[#allocation10] ss:$0 sm:$0xff]  ;;  %s3696_s25 = scalar_lea.vmem %s2623_s23, 1024  ;;  %p3701_p13 = scmp.lt.s32.totalorder %s2623_s23, %s2623_s23 }
  0xdf   :  { %2860 = vmatprep.mubr.msk.f32.mxu0 %vm209_vm1, %v193_v6  ;;  %3122 = vmatprep.subr.bf16.mxu0 %v3748_v8  ;;  %v465_v18 = vld [vmem:[#allocation13 + $0x10] sm:$0xff]  ;;  %v466_v19 = vld [vmem:[#allocation13 + $0x18] sm:$0xff]  ;;  %v4024_v20 = vpack.c.bf16 %v462_v15, %v461_v14  ;;  %v2650_v36 = vld [vmem:[#allocation15] ss:$0 sm:$0xff]  ;;  %p3697_p12 = scmp.ne.s32.totalorder %s2623_s23, %s3696_s25  ;;  %p3702_p0 = scmp.lt.s32.totalorder %s3696_s25, %s3696_s25 }
  0xe0   :  { %2870 = vmatmul.mubr.msk.f32.gmra.mrb[2].mxu1 %vm209_vm1, %v200_v5  ;;  %2861 = vmatmul.mubr.msk.f32.vlgmr.msra.gmra.mrb[0].mxu0 %vm209_vm1, %v194_v12  ;;  %v196_v21 = vld [vmem:[#allocation4 + $0x18] sm:$0xff]  ;;  %v4030_v22 = vpack.c.bf16 %v466_v19, %v465_v18 }
  0xe1   :  { %2874 = vmatprep.mubr.msk.f32.mxu1 %vm209_vm1, %v193_v6  ;;  %3124 = vmatpush3.bf16.msra.mxu0 %v4014_v13  ;;  %p3703_p1 = por %p3702_p0, %p3701_p13 }
  0xe2   :  { %2863 = vmatprep.mubr.msk.f32.mxu0 %vm209_vm1, %v195_v17  ;;  %3125 = vmatprep.subr.bf16.mxu0 %v3748_v8 }
  0xe3   :  { %p3704_p2 = pnand %p3703_p1, %p3697_p12 }
  0xe4   :  { %2875 = vmatmul.mubr.msk.f32.vlgmr.msra.gmra.mrb[4].mxu1 %vm209_vm1, %v194_v12  ;;  %2864 = vmatmul.mubr.msk.f32.gmra.mrb[2].mxu0 %vm209_vm1, %v196_v21 }
  0xe5   :  { %3130 = vmatpush3.bf16.msra.mxu1 %v4019_v16  ;;  %2877 = vmatprep.mubr.msk.f32.mxu1 %vm209_vm1, %v195_v17 }
  0xe6   :  { %3131 = vmatprep.subr.bf16.mxu1 %v3748_v8  ;;  %3127 = vmatpush3.bf16.msra.mxu0 %v4024_v20 }
  0xe7   :  { %2894 = vmatprep.mubr.msk.f32.mxu0 %vm3749_vm2, %v3750_v23  ;;  %3134 = vmatprep.subr.bf16.mxu0 %v3748_v8 }
  0xe8   :  { %2878 = vmatmul.mubr.msk.f32.gmra.mrb[6].mxu1 %vm209_vm1, %v196_v21 }
  0xe9   :  { %2880 = vmatprep.mubr.msk.f32.mxu1 %vm209_vm1, %v197_v1  ;;  %3133 = vmatpush3.bf16.msra.mxu1 %v4030_v22 }
  0xea   :  { %2895 = vmatmul.mubr.f32.vlgmr.msra.gmra.mrb[4].mxu0 %v3750_v23  ;;  %3140 = vmatprep.subr.bf16.mxu1 %v3748_v8 }
  0xeb   :  { %3136 = vmatpush3.bf16.msra.mxu0 %v4014_v13  ;;  %2916 = vmatprep.mubr.msk.f32.mxu0 %vm3749_vm2, %v3750_v23 }
  0xec   :  { %2881 = vmatmul.mubr.msk.f32.gmra.mrb[8].mxu1 %vm209_vm1, %v198_v2  ;;  %3137 = vmatprep.subr.bf16.mxu0 %v3748_v8 }
  0xed   :  { %2883 = vmatprep.mubr.msk.f32.mxu1 %vm209_vm1, %v199_v4 }
  0xef   :  { %3139 = vmatpush3.bf16.msra.mxu0 %v4024_v20 }
  0xf0   :  { %2884 = vmatmul.mubr.msk.f32.gmra.mrb[10].mxu1 %vm209_vm1, %v200_v5  ;;  %3146 = vmatprep.subr.bf16.mxu0 %v3748_v8 }
  0xf1   :  { %2905 = vmatprep.mubr.msk.f32.mxu1 %vm3749_vm2, %v3750_v23 }
  0xf4   :  { %2906 = vmatmul.mubr.f32.vlgmr.msra.gmra.mrb[12].mxu1 %v3750_v23 }
  0xf5   :  { %3142 = vmatpush3.bf16.msra.mxu1 %v4019_v16  ;;  %2927 = vmatprep.mubr.msk.f32.mxu1 %vm3749_vm2, %v3750_v23 }
  0xf6   :  { %3143 = vmatprep.subr.bf16.mxu1 %v3748_v8 }
  0xf9   :  { %3145 = vmatpush3.bf16.msra.mxu1 %v4030_v22 }
  0xfa   :  { %3152 = vmatprep.subr.bf16.mxu1 %v3748_v8 }
 0x1af   :  { %v2868_v25 = vpop.f32.mrb[0].mxu1 }
 0x1b0   :  { %v4060_v26 = vadd.f32 %v2868_v25, %v2640_v24  ;;  %v324_v27 = vpop.f32.mrb[1].mxu1 }
 0x1b1   :  { %v4062_v28 = vadd.f32 %v2640_v24, %v324_v27 }
 0x1b3   :  { %v2871_v29 = vpop.f32.mrb[2].mxu1  ;;  %v2862_v30 = vpop.f32.mrb[0].mxu0 }
 0x1b4   :  { %v4064_v31 = vadd.f32 %v2871_v29, %v2640_v24  ;;  %v334_v32 = vpop.f32.mrb[3].mxu1  ;;  %v4066_v33 = vadd.f32 %v2862_v30, %v2640_v24  ;;  %v304_v34 = vpop.f32.mrb[1].mxu0 }
 0x1b5   :  { %v4068_v35 = vadd.f32 %v2640_v24, %v334_v32  ;;  %v305_v45 = vadd.f32 %v2640_v24, %v304_v34 }
 0x1b7   :  { %v2876_v37 = vpop.f32.mrb[4].mxu1  ;;  %v2865_v38 = vpop.f32.mrb[2].mxu0 }
 0x1b8   :  { %v4070_v39 = vadd.f32 %v2876_v37, %v2650_v36  ;;  %v420_v40 = vpop.f32.mrb[5].mxu1  ;;  %v4072_v41 = vadd.f32 %v2865_v38, %v2640_v24  ;;  %v314_v42 = vpop.f32.mrb[3].mxu0 }
 0x1b9   :  { %v4074_v43 = vadd.f32 %v2650_v36, %v420_v40  ;;  %v4076_v44 = vadd.f32 %v2640_v24, %v314_v42 }
 0x1bb   :  { %v2879_v46 = vpop.f32.mrb[6].mxu1 }
 0x1bc   :  { %v4078_v47 = vadd.f32 %v2879_v46, %v2650_v36  ;;  %v430_v48 = vpop.f32.mrb[7].mxu1 }
 0x1bd   :  { %v4080_v49 = vadd.f32 %v2650_v36, %v430_v48  ;;  %v537_v50 = vpop.f32.mrb[4].mxu0 }
 0x1be   :  { %v541_v51 = vadd.f32 %v537_v50, %v305_v45  ;;  %v2896_v52 = vpop.f32.mrb[5].mxu0 }
 0x1bf   :  { %v2882_v53 = vpop.f32.mrb[8].mxu1 }
 0x1c0   :  { %v4082_v54 = vadd.f32 %v2882_v53, %v2650_v36  ;;  %v440_v55 = vpop.f32.mrb[9].mxu1  ;;  %v2660_v3 = vmul.f32 -1.442695, %v541_v51 }
 0x1c1   :  { %v4084_v56 = vadd.f32 %v2650_v36, %v440_v55 }
 0x1c3   :  { %v2885_v57 = vpop.f32.mrb[10].mxu1 }
 0x1c4   :  { %v450_v58 = vpop.f32.mrb[11].mxu1  ;;  %v456_v60 = vadd.f32 %v2885_v57, %v2650_v36 }
 0x1c5   :  { %v4086_v59 = vadd.f32 %v2650_v36, %v450_v58 }
 0x1c7   :  { %v608_v61 = vpop.f32.mrb[12].mxu1 }
 0x1c8   :  { %v612_v62 = vadd.f32 %v608_v61, %v456_v60  ;;  %v2907_v63 = vpop.f32.mrb[13].mxu1 }
 0x1ca   :  { %3272 = vtanh.f32 %v612_v62  ;;  %v2661_v2 = vmul.f32 -1.442695, %v612_v62 }
 0x1cb   :  { %3274 = vtanh.f32 %v541_v51 }
 0x1cc   :  { %3276 = vpow2.f32 %v2661_v2 }
 0x1cd   :  { %3278 = vpow2.f32 %v2660_v3 }
 0x1d4   :  { %v3273_v0 = vpop.eup %3272 }
 0x1d5   :  { %646 = vrot.lane.b32.xlu0 %v3273_v0, %s3751_s11  ;;  %v3275_v1 = vpop.eup %3274 }
 0x1d6   :  { %v3277_v4 = vpop.eup %3276 }
 0x1d7   :  { %v640_v5 = vadd.f32 1.0, %v3277_v4  ;;  %v3279_v6 = vpop.eup %3278 }
 0x1d8   :  { %v616_v7 = vadd.f32 1.0, %v3279_v6 }
 0x1d9   :  { %622 = vrot.lane.b32.xlu0 %v3275_v1, %s3751_s11  ;;  %3280 = vrcp.f32 %v640_v5 }
 0x1da   :  { %3282 = vrcp.f32 %v616_v7 }
 0x1e3   :  { %v3281_v9 = vpop.eup %3280 }
 0x1e4   :  { %v3283_v12 = vpop.eup %3282  ;;  %v644_v17 = vmul.f32 0.0, %v3281_v9 }
 0x1e5   :  { %v620_v21 = vmul.f32 0.0, %v3283_v12 }
 0x247   :  { %v647_v10 = vpop.permute.xlu0 %646 }
 0x248   :  { %v649_v11 = vmul.f32 %v3281_v9, %v647_v10 }
 0x24a   :  { %651 = vrot.lane.b32.xlu1 %v649_v11, %s3752_s6 }
 0x24b   :  { %v623_v14 = vpop.permute.xlu0 %622 }
 0x24c   :  { %v625_v15 = vmul.f32 %v3283_v12, %v623_v14 }
 0x24e   :  { %627 = vrot.lane.b32.xlu1 %v625_v15, %s3752_s6 }
 0x2bc   :  { %v652_v18 = vpop.permute.xlu1 %651 }
 0x2bd   :  { %v4092_v19 = vadd.f32 %v652_v18, %v644_v17 }
 0x2bf   :  { %3284 = vtanh.f32 %v4092_v19 }
 0x2c0   :  { %v628_v24 = vpop.permute.xlu1 %627 }
 0x2c1   :  { %v4095_v25 = vadd.f32 %v628_v24, %v620_v21 }
 0x2c3   :  { %3286 = vtanh.f32 %v4095_v25 }
 0x2c9   :  { %v3285_v27 = vpop.eup %3284 }
 0x2ca   :  { %657 = vrot.lane.b32.xlu0 %v3285_v27, %s3751_s11 }
 0x2cd   :  { %v3287_v29 = vpop.eup %3286 }
 0x2ce   :  { %633 = vrot.lane.b32.xlu1 %v3287_v29, %s3751_s11 }
 0x33c   :  { %v658_v30 = vpop.permute.xlu0 %657 }
 0x33d   :  { %v660_v32 = vmul.f32 %v3281_v9, %v658_v30 }
 0x33f   :  { %667 = vrot.lane.b32.xlu0 %v660_v32, %s3752_s6 }
 0x340   :  { %v634_v34 = vpop.permute.xlu1 %633 }
 0x341   :  { %v636_v36 = vmul.f32 %v3283_v12, %v634_v34 }
 0x343   :  { %662 = vrot.lane.b32.xlu1 %v636_v36, %s3752_s6 }
 0x3b1   :  { %v668_v37 = vpop.permute.xlu0 %667 }
 0x3b2   :  { %670 = vst.msk [vmem:[#allocation3 + $0x38] sm:$0xff] %vm467_vm3, %v668_v37  ;;  %2928 = vmatmul.mubr.msk.f32.vlgmr.msra.gmra.mrb[14].mxu1 %vm467_vm3, %v668_v37 }
 0x3b3   :  { %3154 = vmatpush3.bf16.msra.mxu1 %v4019_v16  ;;  %2949 = vmatprep.mubr.msk.f32.mxu1 %vm3749_vm2, %v3750_v23 }
 0x3b4   :  { %3155 = vmatprep.subr.bf16.mxu1 %v3748_v8 }
 0x3b5   :  { %v663_v38 = vpop.permute.xlu1 %662 }
 0x3b6   :  { %665 = vst.msk [vmem:[#allocation2] sm:$0xff] %vm467_vm3, %v663_v38  ;;  %2917 = vmatmul.mubr.msk.f32.vlgmr.msra.gmra.mrb[6].mxu0 %vm467_vm3, %v663_v38 }
 0x3b7   :  { %3148 = vmatpush3.bf16.msra.mxu0 %v4014_v13  ;;  %3157 = vmatpush3.bf16.msra.mxu1 %v4030_v22 }
 0x3b8   :  { %3149 = vmatprep.subr.bf16.mxu0 %v3748_v8  ;;  %2938 = vmatprep.mubr.msk.f32.mxu0 %vm3749_vm2, %v3750_v23 }
 0x3b9   :  { %3164 = vmatprep.subr.bf16.mxu1 %v3748_v8 }
 0x3bb   :  { %3151 = vmatpush3.bf16.msra.mxu0 %v4024_v20 }
 0x3bc   :  { %3158 = vmatprep.subr.bf16.mxu0 %v3748_v8 }
 0x485   :  { %v812_v40 = vpop.f32.mrb[14].mxu1 }
 0x486   :  { %v816_v42 = vadd.f32 %v812_v40, %v4086_v59  ;;  %v2929_v45 = vpop.f32.mrb[15].mxu1 }
 0x488   :  { %3288 = vtanh.f32 %v816_v42  ;;  %v2665_v53 = vmul.f32 -1.442695, %v816_v42 }
 0x489   :  { %v739_v46 = vpop.f32.mrb[6].mxu0 }
 0x48a   :  { %v743_v48 = vadd.f32 %v739_v46, %v4066_v33  ;;  %v2918_v50 = vpop.f32.mrb[7].mxu0 }
 0x48c   :  { %3290 = vtanh.f32 %v743_v48  ;;  %v2664_v55 = vmul.f32 -1.442695, %v743_v48 }
 0x48d   :  { %3292 = vpow2.f32 %v2665_v53 }
 0x48e   :  { %3294 = vpow2.f32 %v2664_v55 }
 0x492   :  { %v3289_v51 = vpop.eup %3288 }
 0x493   :  { %850 = vrot.lane.b32.xlu0 %v3289_v51, %s3751_s11 }
 0x496   :  { %v3291_v52 = vpop.eup %3290 }
 0x497   :  { %826 = vrot.lane.b32.xlu1 %v3291_v52, %s3751_s11  ;;  %v3293_v57 = vpop.eup %3292 }
 0x498   :  { %v844_v58 = vadd.f32 1.0, %v3293_v57  ;;  %v3295_v59 = vpop.eup %3294 }
 0x499   :  { %v820_v60 = vadd.f32 1.0, %v3295_v59 }
 0x49a   :  { %3296 = vrcp.f32 %v844_v58 }
 0x49b   :  { %3298 = vrcp.f32 %v820_v60 }
 0x4a4   :  { %v3297_v61 = vpop.eup %3296 }
 0x4a5   :  { %v3299_v63 = vpop.eup %3298  ;;  %v848_v2 = vmul.f32 %v3297_v61, %v4092_v19 }
 0x4a6   :  { %v824_v5 = vmul.f32 %v3299_v63, %v4095_v25 }
 0x505   :  { %v851_v33 = vpop.permute.xlu0 %850 }
 0x506   :  { %v853_v62 = vmul.f32 %v3297_v61, %v851_v33 }
 0x508   :  { %855 = vrot.lane.b32.xlu0 %v853_v62, %s3752_s6 }
 0x509   :  { %v827_v0 = vpop.permute.xlu1 %826 }
 0x50a   :  { %v829_v1 = vmul.f32 %v3299_v63, %v827_v0 }
 0x50c   :  { %831 = vrot.lane.b32.xlu1 %v829_v1, %s3752_s6 }
 0x57a   :  { %v856_v3 = vpop.permute.xlu0 %855 }
 0x57b   :  { %v858_v4 = vadd.f32 %v856_v3, %v848_v2 }
 0x57d   :  { %3300 = vtanh.f32 %v858_v4 }
 0x57e   :  { %v832_v6 = vpop.permute.xlu1 %831 }
 0x57f   :  { %v834_v7 = vadd.f32 %v832_v6, %v824_v5 }
 0x581   :  { %3302 = vtanh.f32 %v834_v7 }
 0x587   :  { %v3301_v9 = vpop.eup %3300 }
 0x588   :  { %861 = vrot.lane.b32.xlu0 %v3301_v9, %s3751_s11 }
 0x58b   :  { %v3303_v10 = vpop.eup %3302 }
 0x58c   :  { %837 = vrot.lane.b32.xlu1 %v3303_v10, %s3751_s11 }
 0x5fa   :  { %v862_v11 = vpop.permute.xlu0 %861 }
 0x5fb   :  { %v864_v12 = vmul.f32 %v3297_v61, %v862_v11 }
 0x5fd   :  { %871 = vrot.lane.b32.xlu0 %v864_v12, %s3752_s6 }
 0x5fe   :  { %v838_v14 = vpop.permute.xlu1 %837 }
 0x5ff   :  { %v840_v15 = vmul.f32 %v3299_v63, %v838_v14 }
 0x601   :  { %866 = vrot.lane.b32.xlu1 %v840_v15, %s3752_s6 }
 0x66f   :  { %v872_v17 = vpop.permute.xlu0 %871 }
 0x670   :  { %874 = vst.msk [vmem:[#allocation3 + $0x30] sm:$0xff] %vm467_vm3, %v872_v17  ;;  %2950 = vmatmul.mubr.msk.f32.vlgmr.msra.gmra.mrb[16].mxu1 %vm467_vm3, %v872_v17 }
 0x671   :  { %3166 = vmatpush3.bf16.msra.mxu1 %v4019_v16  ;;  %2971 = vmatprep.mubr.msk.f32.mxu1 %vm3749_vm2, %v3750_v23 }
 0x672   :  { %3167 = vmatprep.subr.bf16.mxu1 %v3748_v8 }
 0x673   :  { %v867_v18 = vpop.permute.xlu1 %866 }
 0x674   :  { %869 = vst.msk [vmem:[#allocation2 + $0x8] sm:$0xff] %vm467_vm3, %v867_v18  ;;  %2939 = vmatmul.mubr.msk.f32.vlgmr.msra.gmra.mrb[8].mxu0 %vm467_vm3, %v867_v18 }
 0x675   :  { %3160 = vmatpush3.bf16.msra.mxu0 %v4014_v13  ;;  %3169 = vmatpush3.bf16.msra.mxu1 %v4030_v22 }
 0x676   :  { %3161 = vmatprep.subr.bf16.mxu0 %v3748_v8  ;;  %2960 = vmatprep.mubr.msk.f32.mxu0 %vm3749_vm2, %v3750_v23 }
 0x677   :  { %3176 = vmatprep.subr.bf16.mxu1 %v3748_v8 }
 0x679   :  { %3163 = vmatpush3.bf16.msra.mxu0 %v4024_v20 }
 0x67a   :  { %3170 = vmatprep.subr.bf16.mxu0 %v3748_v8 }
 0x743   :  { %v1016_v19 = vpop.f32.mrb[16].mxu1 }
 0x744   :  { %v1020_v21 = vadd.f32 %v1016_v19, %v4082_v54  ;;  %v2951_v24 = vpop.f32.mrb[17].mxu1 }
 0x746   :  { %3304 = vtanh.f32 %v1020_v21  ;;  %v2669_v34 = vmul.f32 -1.442695, %v1020_v21 }
 0x747   :  { %v943_v25 = vpop.f32.mrb[8].mxu0 }
 0x748   :  { %v947_v27 = vadd.f32 %v943_v25, %v4076_v44  ;;  %v2940_v29 = vpop.f32.mrb[9].mxu0 }
 0x74a   :  { %3306 = vtanh.f32 %v947_v27  ;;  %v2668_v36 = vmul.f32 -1.442695, %v947_v27 }
 0x74b   :  { %3308 = vpow2.f32 %v2669_v34 }
 0x74c   :  { %3310 = vpow2.f32 %v2668_v36 }
 0x750   :  { %v3305_v30 = vpop.eup %3304 }
 0x751   :  { %1054 = vrot.lane.b32.xlu0 %v3305_v30, %s3751_s11 }
 0x754   :  { %v3307_v32 = vpop.eup %3306 }
 0x755   :  { %1030 = vrot.lane.b32.xlu1 %v3307_v32, %s3751_s11  ;;  %v3309_v37 = vpop.eup %3308 }
 0x756   :  { %v1048_v38 = vadd.f32 1.0, %v3309_v37  ;;  %v3311_v54 = vpop.eup %3310 }
 0x757   :  { %v1024_v40 = vadd.f32 1.0, %v3311_v54 }
 0x758   :  { %3312 = vrcp.f32 %v1048_v38 }
 0x759   :  { %3314 = vrcp.f32 %v1024_v40 }
 0x762   :  { %v3313_v42 = vpop.eup %3312 }
 0x763   :  { %v3315_v46 = vpop.eup %3314  ;;  %v1052_v51 = vmul.f32 %v3313_v42, %v858_v4 }
 0x764   :  { %v1028_v55 = vmul.f32 %v3315_v46, %v834_v7 }
 0x7c3   :  { %v1055_v44 = vpop.permute.xlu0 %1054 }
 0x7c4   :  { %v1057_v45 = vmul.f32 %v3313_v42, %v1055_v44 }
 0x7c6   :  { %1059 = vrot.lane.b32.xlu0 %v1057_v45, %s3752_s6 }
 0x7c7   :  { %v1031_v48 = vpop.permute.xlu1 %1030 }
 0x7c8   :  { %v1033_v50 = vmul.f32 %v3315_v46, %v1031_v48 }
 0x7ca   :  { %1035 = vrot.lane.b32.xlu1 %v1033_v50, %s3752_s6 }
 0x838   :  { %v1060_v52 = vpop.permute.xlu0 %1059 }
 0x839   :  { %v1062_v53 = vadd.f32 %v1060_v52, %v1052_v51 }
 0x83b   :  { %3316 = vtanh.f32 %v1062_v53 }
 0x83c   :  { %v1036_v57 = vpop.permute.xlu1 %1035 }
 0x83d   :  { %v1038_v58 = vadd.f32 %v1036_v57, %v1028_v55 }
 0x83f   :  { %3318 = vtanh.f32 %v1038_v58 }
 0x845   :  { %v3317_v59 = vpop.eup %3316 }
 0x846   :  { %1065 = vrot.lane.b32.xlu0 %v3317_v59, %s3751_s11 }
 0x849   :  { %v3319_v60 = vpop.eup %3318 }
 0x84a   :  { %1041 = vrot.lane.b32.xlu1 %v3319_v60, %s3751_s11 }
 0x8b8   :  { %v1066_v61 = vpop.permute.xlu0 %1065 }
 0x8b9   :  { %v1068_v33 = vmul.f32 %v3313_v42, %v1066_v61 }
 0x8bb   :  { %1075 = vrot.lane.b32.xlu0 %v1068_v33, %s3752_s6 }
 0x8bc   :  { %v1042_v62 = vpop.permute.xlu1 %1041 }
 0x8bd   :  { %v1044_v63 = vmul.f32 %v3315_v46, %v1042_v62 }
 0x8bf   :  { %1070 = vrot.lane.b32.xlu1 %v1044_v63, %s3752_s6 }
 0x92d   :  { %v1076_v0 = vpop.permute.xlu0 %1075 }
 0x92e   :  { %1078 = vst.msk [vmem:[#allocation3 + $0x28] sm:$0xff] %vm467_vm3, %v1076_v0  ;;  %2972 = vmatmul.mubr.msk.f32.vlgmr.msra.gmra.mrb[18].mxu1 %vm467_vm3, %v1076_v0 }
 0x92f   :  { %3178 = vmatpush3.bf16.msra.mxu1 %v4019_v16  ;;  %2993 = vmatprep.mubr.msk.f32.mxu1 %vm3749_vm2, %v3750_v23 }
 0x930   :  { %3179 = vmatprep.subr.bf16.mxu1 %v3748_v8 }
 0x931   :  { %v1071_v1 = vpop.permute.xlu1 %1070 }
 0x932   :  { %1073 = vst.msk [vmem:[#allocation2 + $0x10] sm:$0xff] %vm467_vm3, %v1071_v1  ;;  %2961 = vmatmul.mubr.msk.f32.vlgmr.msra.gmra.mrb[10].mxu0 %vm467_vm3, %v1071_v1 }
 0x933   :  { %3172 = vmatpush3.bf16.msra.mxu0 %v4014_v13  ;;  %3181 = vmatpush3.bf16.msra.mxu1 %v4030_v22 }
 0x934   :  { %3173 = vmatprep.subr.bf16.mxu0 %v3748_v8  ;;  %2982 = vmatprep.mubr.msk.f32.mxu0 %vm3749_vm2, %v3750_v23 }
 0x935   :  { %3188 = vmatprep.subr.bf16.mxu1 %v3748_v8 }
 0x937   :  { %3175 = vmatpush3.bf16.msra.mxu0 %v4024_v20 }
 0x938   :  { %3182 = vmatprep.subr.bf16.mxu0 %v3748_v8 }
 0xa01   :  { %v1220_v2 = vpop.f32.mrb[18].mxu1 }
 0xa02   :  { %v1224_v3 = vadd.f32 %v1220_v2, %v4084_v56  ;;  %v2973_v4 = vpop.f32.mrb[19].mxu1 }
 0xa04   :  { %3320 = vtanh.f32 %v1224_v3  ;;  %v2673_v11 = vmul.f32 -1.442695, %v1224_v3 }
 0xa05   :  { %v1147_v5 = vpop.f32.mrb[10].mxu0 }
 0xa06   :  { %v1151_v6 = vadd.f32 %v1147_v5, %v4072_v41  ;;  %v2962_v7 = vpop.f32.mrb[11].mxu0 }
 0xa08   :  { %3322 = vtanh.f32 %v1151_v6  ;;  %v2672_v12 = vmul.f32 -1.442695, %v1151_v6 }
 0xa09   :  { %3324 = vpow2.f32 %v2673_v11 }
 0xa0a   :  { %3326 = vpow2.f32 %v2672_v12 }
 0xa0e   :  { %v3321_v9 = vpop.eup %3320 }
 0xa0f   :  { %1258 = vrot.lane.b32.xlu0 %v3321_v9, %s3751_s11 }
 0xa12   :  { %v3323_v10 = vpop.eup %3322 }
 0xa13   :  { %1234 = vrot.lane.b32.xlu1 %v3323_v10, %s3751_s11  ;;  %v3325_v14 = vpop.eup %3324 }
 0xa14   :  { %v1252_v15 = vadd.f32 1.0, %v3325_v14  ;;  %v3327_v56 = vpop.eup %3326 }
 0xa15   :  { %v1228_v17 = vadd.f32 1.0, %v3327_v56 }
 0xa16   :  { %3328 = vrcp.f32 %v1252_v15 }
 0xa17   :  { %3330 = vrcp.f32 %v1228_v17 }
 0xa20   :  { %v3329_v18 = vpop.eup %3328 }
 0xa21   :  { %v3331_v21 = vpop.eup %3330  ;;  %v1256_v27 = vmul.f32 %v3329_v18, %v1062_v53 }
 0xa22   :  { %v1232_v32 = vmul.f32 %v3331_v21, %v1038_v58 }
 0xa81   :  { %v1259_v41 = vpop.permute.xlu0 %1258 }
 0xa82   :  { %v1261_v19 = vmul.f32 %v3329_v18, %v1259_v41 }
 0xa84   :  { %1263 = vrot.lane.b32.xlu0 %v1261_v19, %s3752_s6 }
 0xa85   :  { %v1235_v24 = vpop.permute.xlu1 %1234 }
 0xa86   :  { %v1237_v25 = vmul.f32 %v3331_v21, %v1235_v24 }
 0xa88   :  { %1239 = vrot.lane.b32.xlu1 %v1237_v25, %s3752_s6 }
 0xaf6   :  { %v1264_v29 = vpop.permute.xlu0 %1263 }
 0xaf7   :  { %v1266_v30 = vadd.f32 %v1264_v29, %v1256_v27 }
 0xaf9   :  { %3332 = vtanh.f32 %v1266_v30 }
 0xafa   :  { %v1240_v34 = vpop.permute.xlu1 %1239 }
 0xafb   :  { %v1242_v36 = vadd.f32 %v1240_v34, %v1232_v32 }
 0xafd   :  { %3334 = vtanh.f32 %v1242_v36 }
 0xb03   :  { %v3333_v37 = vpop.eup %3332 }
 0xb04   :  { %1269 = vrot.lane.b32.xlu0 %v3333_v37, %s3751_s11 }
 0xb07   :  { %v3335_v38 = vpop.eup %3334 }
 0xb08   :  { %1245 = vrot.lane.b32.xlu1 %v3335_v38, %s3751_s11 }
 0xb76   :  { %v1270_v54 = vpop.permute.xlu0 %1269 }
 0xb77   :  { %v1272_v40 = vmul.f32 %v3329_v18, %v1270_v54 }
 0xb79   :  { %1279 = vrot.lane.b32.xlu0 %v1272_v40, %s3752_s6 }
 0xb7a   :  { %v1246_v42 = vpop.permute.xlu1 %1245 }
 0xb7b   :  { %v1248_v44 = vmul.f32 %v3331_v21, %v1246_v42 }
 0xb7d   :  { %1274 = vrot.lane.b32.xlu1 %v1248_v44, %s3752_s6 }
 0xbeb   :  { %v1280_v45 = vpop.permute.xlu0 %1279 }
 0xbec   :  { %1282 = vst.msk [vmem:[#allocation3 + $0x20] sm:$0xff] %vm467_vm3, %v1280_v45  ;;  %2994 = vmatmul.mubr.msk.f32.vlgmr.msra.gmra.mrb[20].mxu1 %vm467_vm3, %v1280_v45 }
 0xbed   :  { %3190 = vmatpush3.bf16.msra.mxu1 %v4019_v16  ;;  %3015 = vmatprep.mubr.msk.f32.mxu1 %vm3749_vm2, %v3750_v23 }
 0xbee   :  { %3191 = vmatprep.subr.bf16.mxu1 %v3748_v8 }
 0xbef   :  { %v1275_v46 = vpop.permute.xlu1 %1274 }
 0xbf0   :  { %1277 = vst.msk [vmem:[#allocation2 + $0x18] sm:$0xff] %vm467_vm3, %v1275_v46  ;;  %2983 = vmatmul.mubr.msk.f32.vlgmr.msra.gmra.mrb[12].mxu0 %vm467_vm3, %v1275_v46 }
 0xbf1   :  { %3184 = vmatpush3.bf16.msra.mxu0 %v4014_v13  ;;  %3193 = vmatpush3.bf16.msra.mxu1 %v4030_v22 }
 0xbf2   :  { %3185 = vmatprep.subr.bf16.mxu0 %v3748_v8  ;;  %3004 = vmatprep.mubr.msk.f32.mxu0 %vm3749_vm2, %v3750_v23 }
 0xbf3   :  { %3200 = vmatprep.subr.bf16.mxu1 %v3748_v8 }
 0xbf5   :  { %3187 = vmatpush3.bf16.msra.mxu0 %v4024_v20 }
 0xbf6   :  { %3194 = vmatprep.subr.bf16.mxu0 %v3748_v8 }
 0xcbf   :  { %v1424_v48 = vpop.f32.mrb[20].mxu1 }
 0xcc0   :  { %v1428_v50 = vadd.f32 %v1424_v48, %v4078_v47  ;;  %v2995_v51 = vpop.f32.mrb[21].mxu1 }
 0xcc2   :  { %3336 = vtanh.f32 %v1428_v50  ;;  %v2677_v59 = vmul.f32 -1.442695, %v1428_v50 }
 0xcc3   :  { %v1351_v52 = vpop.f32.mrb[12].mxu0 }
 0xcc4   :  { %v1355_v53 = vadd.f32 %v1351_v52, %v4062_v28  ;;  %v2984_v55 = vpop.f32.mrb[13].mxu0 }
 0xcc6   :  { %3338 = vtanh.f32 %v1355_v53  ;;  %v2676_v60 = vmul.f32 -1.442695, %v1355_v53 }
 0xcc7   :  { %3340 = vpow2.f32 %v2677_v59 }
 0xcc8   :  { %3342 = vpow2.f32 %v2676_v60 }
 0xccc   :  { %v3337_v57 = vpop.eup %3336 }
 0xccd   :  { %1462 = vrot.lane.b32.xlu0 %v3337_v57, %s3751_s11 }
 0xcd0   :  { %v3339_v58 = vpop.eup %3338 }
 0xcd1   :  { %1438 = vrot.lane.b32.xlu1 %v3339_v58, %s3751_s11  ;;  %v3341_v61 = vpop.eup %3340 }
 0xcd2   :  { %v1456_v33 = vadd.f32 1.0, %v3341_v61  ;;  %v3343_v47 = vpop.eup %3342 }
 0xcd3   :  { %v1432_v62 = vadd.f32 1.0, %v3343_v47 }
 0xcd4   :  { %3344 = vrcp.f32 %v1456_v33 }
 0xcd5   :  { %3346 = vrcp.f32 %v1432_v62 }
 0xcde   :  { %v3345_v63 = vpop.eup %3344 }
 0xcdf   :  { %v3347_v1 = vpop.eup %3346  ;;  %v1460_v4 = vmul.f32 %v3345_v63, %v1266_v30 }
 0xce0   :  { %v1436_v7 = vmul.f32 %v3347_v1, %v1242_v36 }
 0xd3f   :  { %v1463_v28 = vpop.permute.xlu0 %1462 }
 0xd40   :  { %v1465_v0 = vmul.f32 %v3345_v63, %v1463_v28 }
 0xd42   :  { %1467 = vrot.lane.b32.xlu0 %v1465_v0, %s3752_s6 }
 0xd43   :  { %v1439_v2 = vpop.permute.xlu1 %1438 }
 0xd44   :  { %v1441_v3 = vmul.f32 %v3347_v1, %v1439_v2 }
 0xd46   :  { %1443 = vrot.lane.b32.xlu1 %v1441_v3, %s3752_s6 }
 0xdb4   :  { %v1468_v5 = vpop.permute.xlu0 %1467 }
 0xdb5   :  { %v1470_v6 = vadd.f32 %v1468_v5, %v1460_v4 }
 0xdb7   :  { %3348 = vtanh.f32 %v1470_v6 }
 0xdb8   :  { %v1444_v9 = vpop.permute.xlu1 %1443 }
 0xdb9   :  { %v1446_v10 = vadd.f32 %v1444_v9, %v1436_v7 }
 0xdbb   :  { %3350 = vtanh.f32 %v1446_v10 }
 0xdc1   :  { %v3349_v11 = vpop.eup %3348 }
 0xdc2   :  { %1473 = vrot.lane.b32.xlu0 %v3349_v11, %s3751_s11 }
 0xdc5   :  { %v3351_v12 = vpop.eup %3350 }
 0xdc6   :  { %1449 = vrot.lane.b32.xlu1 %v3351_v12, %s3751_s11 }
 0xe34   :  { %v1474_v14 = vpop.permute.xlu0 %1473 }
 0xe35   :  { %v1476_v15 = vmul.f32 %v3345_v63, %v1474_v14 }
 0xe37   :  { %1483 = vrot.lane.b32.xlu0 %v1476_v15, %s3752_s6 }
 0xe38   :  { %v1450_v56 = vpop.permute.xlu1 %1449 }
 0xe39   :  { %v1452_v17 = vmul.f32 %v3347_v1, %v1450_v56 }
 0xe3b   :  { %1478 = vrot.lane.b32.xlu1 %v1452_v17, %s3752_s6 }
 0xea9   :  { %v1484_v18 = vpop.permute.xlu0 %1483 }
 0xeaa   :  { %1486 = vst.msk [vmem:[#allocation3 + $0x18] sm:$0xff] %vm467_vm3, %v1484_v18  ;;  %3016 = vmatmul.mubr.msk.f32.vlgmr.msra.gmra.mrb[22].mxu1 %vm467_vm3, %v1484_v18 }
 0xeab   :  { %3202 = vmatpush3.bf16.msra.mxu1 %v4019_v16  ;;  %3037 = vmatprep.mubr.msk.f32.mxu1 %vm3749_vm2, %v3750_v23 }
 0xeac   :  { %3203 = vmatprep.subr.bf16.mxu1 %v3748_v8 }
 0xead   :  { %v1479_v41 = vpop.permute.xlu1 %1478 }
 0xeae   :  { %1481 = vst.msk [vmem:[#allocation2 + $0x20] sm:$0xff] %vm467_vm3, %v1479_v41  ;;  %3005 = vmatmul.mubr.msk.f32.vlgmr.msra.gmra.mrb[14].mxu0 %vm467_vm3, %v1479_v41 }
 0xeaf   :  { %3196 = vmatpush3.bf16.msra.mxu0 %v4014_v13  ;;  %3205 = vmatpush3.bf16.msra.mxu1 %v4030_v22 }
 0xeb0   :  { %3197 = vmatprep.subr.bf16.mxu0 %v3748_v8  ;;  %3026 = vmatprep.mubr.msk.f32.mxu0 %vm3749_vm2, %v3750_v23 }
 0xeb1   :  { %3212 = vmatprep.subr.bf16.mxu1 %v3748_v8 }
 0xeb3   :  { %3199 = vmatpush3.bf16.msra.mxu0 %v4024_v20 }
 0xeb4   :  { %3206 = vmatprep.subr.bf16.mxu0 %v3748_v8 }
 0xf7d   :  { %v1628_v19 = vpop.f32.mrb[22].mxu1 }
 0xf7e   :  { %v1632_v21 = vadd.f32 %v1628_v19, %v4080_v49  ;;  %v3017_v24 = vpop.f32.mrb[23].mxu1 }
 0xf80   :  { %3352 = vtanh.f32 %v1632_v21  ;;  %v2681_v34 = vmul.f32 -1.442695, %v1632_v21 }
 0xf81   :  { %v1555_v25 = vpop.f32.mrb[14].mxu0 }
 0xf82   :  { %v1559_v27 = vadd.f32 %v1555_v25, %v4060_v26  ;;  %v3006_v29 = vpop.f32.mrb[15].mxu0 }
 0xf84   :  { %3354 = vtanh.f32 %v1559_v27  ;;  %v2680_v36 = vmul.f32 -1.442695, %v1559_v27 }
 0xf85   :  { %3356 = vpow2.f32 %v2681_v34 }
 0xf86   :  { %3358 = vpow2.f32 %v2680_v36 }
 0xf8a   :  { %v3353_v30 = vpop.eup %3352 }
 0xf8b   :  { %1666 = vrot.lane.b32.xlu0 %v3353_v30, %s3751_s11 }
 0xf8e   :  { %v3355_v32 = vpop.eup %3354 }
 0xf8f   :  { %1642 = vrot.lane.b32.xlu1 %v3355_v32, %s3751_s11  ;;  %v3357_v37 = vpop.eup %3356 }
 0xf90   :  { %v1660_v38 = vadd.f32 1.0, %v3357_v37  ;;  %v3359_v49 = vpop.eup %3358 }
 0xf91   :  { %v1636_v54 = vadd.f32 1.0, %v3359_v49 }
 0xf92   :  { %3360 = vrcp.f32 %v1660_v38 }
 0xf93   :  { %3362 = vrcp.f32 %v1636_v54 }
 0xf9c   :  { %v3361_v40 = vpop.eup %3360 }
 0xf9d   :  { %v3363_v44 = vpop.eup %3362  ;;  %v1664_v48 = vmul.f32 %v3361_v40, %v1470_v6 }
 0xf9e   :  { %v1640_v52 = vmul.f32 %v3363_v44, %v1446_v10 }
 0xffd   :  { %v1667_v26 = vpop.permute.xlu0 %1666 }
 0xffe   :  { %v1669_v42 = vmul.f32 %v3361_v40, %v1667_v26 }
0x1000   :  { %1671 = vrot.lane.b32.xlu0 %v1669_v42, %s3752_s6 }
0x1001   :  { %v1643_v45 = vpop.permute.xlu1 %1642 }
0x1002   :  { %v1645_v46 = vmul.f32 %v3363_v44, %v1643_v45 }
0x1004   :  { %1647 = vrot.lane.b32.xlu1 %v1645_v46, %s3752_s6 }
0x1072   :  { %v1672_v50 = vpop.permute.xlu0 %1671 }
0x1073   :  { %v1674_v51 = vadd.f32 %v1672_v50, %v1664_v48 }
0x1075   :  { %3364 = vtanh.f32 %v1674_v51 }
0x1076   :  { %v1648_v53 = vpop.permute.xlu1 %1647 }
0x1077   :  { %v1650_v55 = vadd.f32 %v1648_v53, %v1640_v52 }
0x1079   :  { %3366 = vtanh.f32 %v1650_v55 }
0x107f   :  { %v3365_v57 = vpop.eup %3364 }
0x1080   :  { %1677 = vrot.lane.b32.xlu0 %v3365_v57, %s3751_s11 }
0x1083   :  { %v3367_v58 = vpop.eup %3366 }
0x1084   :  { %1653 = vrot.lane.b32.xlu1 %v3367_v58, %s3751_s11 }
0x10f2   :  { %v1678_v59 = vpop.permute.xlu0 %1677 }
0x10f3   :  { %v1680_v60 = vmul.f32 %v3361_v40, %v1678_v59 }
0x10f5   :  { %1687 = vrot.lane.b32.xlu0 %v1680_v60, %s3752_s6 }
0x10f6   :  { %v1654_v61 = vpop.permute.xlu1 %1653 }
0x10f7   :  { %v1656_v33 = vmul.f32 %v3363_v44, %v1654_v61 }
0x10f9   :  { %1682 = vrot.lane.b32.xlu1 %v1656_v33, %s3752_s6 }
0x1167   :  { %v1688_v47 = vpop.permute.xlu0 %1687 }
0x1168   :  { %1690 = vst.msk [vmem:[#allocation3 + $0x10] sm:$0xff] %vm467_vm3, %v1688_v47  ;;  %3038 = vmatmul.mubr.msk.f32.vlgmr.msra.gmra.mrb[24].mxu1 %vm467_vm3, %v1688_v47  ;;  %v2135_v47 = vld [vmem:[#allocation18] sm:$0xff] }
0x1169   :  { %3214 = vmatpush3.bf16.msra.mxu1 %v4019_v16  ;;  %3059 = vmatprep.mubr.msk.f32.mxu1 %vm3749_vm2, %v3750_v23 }
0x116a   :  { %3215 = vmatprep.subr.bf16.mxu1 %v3748_v8 }
0x116b   :  { %v1683_v62 = vpop.permute.xlu1 %1682 }
0x116c   :  { %1685 = vst.msk [vmem:[#allocation2 + $0x28] sm:$0xff] %vm467_vm3, %v1683_v62  ;;  %3027 = vmatmul.mubr.msk.f32.vlgmr.msra.gmra.mrb[16].mxu0 %vm467_vm3, %v1683_v62  ;;  %v2136_v62 = vld [vmem:[#allocation18 + $0x8] sm:$0xff] }
0x116d   :  { %3208 = vmatpush3.bf16.msra.mxu0 %v4014_v13  ;;  %3217 = vmatpush3.bf16.msra.mxu1 %v4030_v22 }
0x116e   :  { %3209 = vmatprep.subr.bf16.mxu0 %v3748_v8  ;;  %3048 = vmatprep.mubr.msk.f32.mxu0 %vm3749_vm2, %v3750_v23 }
0x1171   :  { %3211 = vmatpush3.bf16.msra.mxu0 %v4024_v20 }
0x123b   :  { %v1832_v16 = vpop.f32.mrb[24].mxu1 }
0x123c   :  { %v1836_v63 = vadd.f32 %v1832_v16, %v4070_v39  ;;  %v3039_v28 = vpop.f32.mrb[25].mxu1  ;;  %v3218_v16 = vpack.c.bf16 %v2136_v62, %v2135_v47 }
0x123d   :  { %v2138_v28 = vld [vmem:[#allocation18 + $0x18] sm:$0xff] }
0x123e   :  { %3368 = vtanh.f32 %v1836_v63  ;;  %v2685_v8 = vmul.f32 -1.442695, %v1836_v63  ;;  %3219 = vmatprep.subr.bf16.mxu0 %v3218_v16  ;;  %v2137_v63 = vld [vmem:[#allocation18 + $0x10] sm:$0xff] }
0x123f   :  { %v1759_v0 = vpop.f32.mrb[16].mxu0 }
0x1240   :  { %v1763_v1 = vadd.f32 %v1759_v0, %v4068_v35  ;;  %v3028_v2 = vpop.f32.mrb[17].mxu0  ;;  %v3222_v0 = vpack.c.bf16 %v2138_v28, %v2137_v63 }
0x1242   :  { %3370 = vtanh.f32 %v1763_v1  ;;  %v2684_v23 = vmul.f32 -1.442695, %v1763_v1 }
0x1243   :  { %3372 = vpow2.f32 %v2685_v8 }
0x1244   :  { %3374 = vpow2.f32 %v2684_v23 }
0x1248   :  { %v3369_v13 = vpop.eup %3368 }
0x1249   :  { %1870 = vrot.lane.b32.xlu0 %v3369_v13, %s3751_s11  ;;  %v2131_v13 = vld [vmem:[#allocation16] sm:$0xff] }
0x124c   :  { %v3371_v22 = vpop.eup %3370 }
0x124d   :  { %1846 = vrot.lane.b32.xlu1 %v3371_v22, %s3751_s11  ;;  %v3373_v20 = vpop.eup %3372  ;;  %v2132_v22 = vld [vmem:[#allocation16 + $0x8] sm:$0xff] }
0x124e   :  { %v1864_v3 = vadd.f32 1.0, %v3373_v20  ;;  %v3375_v39 = vpop.eup %3374  ;;  %v3226_v8 = vpack.c.bf16 %v2132_v22, %v2131_v13 }
0x124f   :  { %v1840_v4 = vadd.f32 1.0, %v3375_v39  ;;  %v2421_v39 = vld [vmem:[#allocation21 + $0x8] sm:$0xff] }
0x1250   :  { %3376 = vrcp.f32 %v1864_v3  ;;  %v2420_v3 = vld [vmem:[#allocation21] sm:$0xff] }
0x1251   :  { %3378 = vrcp.f32 %v1840_v4  ;;  %v3234_v4 = vpack.c.bf16 %v2421_v39, %v2420_v3 }
0x1253   :  { %3235 = vmatprep.subr.bf16.mxu1 %v3234_v4 }
0x125a   :  { %v3377_v5 = vpop.eup %3376 }
0x125b   :  { %v3379_v7 = vpop.eup %3378  ;;  %v1868_v11 = vmul.f32 %v3377_v5, %v1674_v51 }
0x125c   :  { %v1844_v15 = vmul.f32 %v3379_v7, %v1650_v55 }
0x12bb   :  { %v1871_v35 = vpop.permute.xlu0 %1870 }
0x12bc   :  { %v1873_v6 = vmul.f32 %v3377_v5, %v1871_v35 }
0x12be   :  { %1875 = vrot.lane.b32.xlu0 %v1873_v6, %s3752_s6 }
0x12bf   :  { %v1847_v9 = vpop.permute.xlu1 %1846 }
0x12c0   :  { %v1849_v10 = vmul.f32 %v3379_v7, %v1847_v9  ;;  %v2134_v9 = vld [vmem:[#allocation16 + $0x18] sm:$0xff] }
0x12c2   :  { %1851 = vrot.lane.b32.xlu1 %v1849_v10, %s3752_s6 }
0x1330   :  { %v1876_v12 = vpop.permute.xlu0 %1875 }
0x1331   :  { %v1878_v14 = vadd.f32 %v1876_v12, %v1868_v11  ;;  %v2117_v11 = vld [vmem:[#allocation3 + $0x10] sm:$0xff] }
0x1333   :  { %3380 = vtanh.f32 %v1878_v14 }
0x1334   :  { %v1852_v56 = vpop.permute.xlu1 %1851 }
0x1335   :  { %v1854_v17 = vadd.f32 %v1852_v56, %v1844_v15  ;;  %v2125_v56 = vmax.f32 %v2117_v11, 0.0 }
0x1337   :  { %3382 = vtanh.f32 %v1854_v17 }
0x133d   :  { %v3381_v18 = vpop.eup %3380 }
0x133e   :  { %1881 = vrot.lane.b32.xlu0 %v3381_v18, %s3751_s11  ;;  %v2119_v18 = vld [vmem:[#allocation3 + $0x20] sm:$0xff] }
0x1341   :  { %v3383_v41 = vpop.eup %3382 }
0x1342   :  { %1857 = vrot.lane.b32.xlu1 %v3383_v41, %s3751_s11 }
0x13b0   :  { %v1882_v19 = vpop.permute.xlu0 %1881 }
0x13b1   :  { %v1884_v21 = vmul.f32 %v3377_v5, %v1882_v19  ;;  %v2127_v19 = vmax.f32 %v2119_v18, 0.0 }
0x13b3   :  { %1891 = vrot.lane.b32.xlu0 %v1884_v21, %s3752_s6  ;;  %v2120_v21 = vld [vmem:[#allocation3 + $0x28] sm:$0xff] }
0x13b4   :  { %v1858_v24 = vpop.permute.xlu1 %1857 }
0x13b5   :  { %v1860_v25 = vmul.f32 %v3379_v7, %v1858_v24  ;;  %v2133_v7 = vld [vmem:[#allocation16 + $0x10] sm:$0xff]  ;;  %v2121_v24 = vld [vmem:[#allocation3 + $0x30] sm:$0xff] }
0x13b6   :  { %v3230_v15 = vpack.c.bf16 %v2134_v9, %v2133_v7 }
0x13b7   :  { %1886 = vrot.lane.b32.xlu1 %v1860_v25, %s3752_s6  ;;  %v2128_v25 = vmax.f32 %v2120_v21, 0.0 }
0x1425   :  { %v1892_v27 = vpop.permute.xlu0 %1891 }
0x1426   :  { %1894 = vst.msk [vmem:[#allocation3 + $0x8] sm:$0xff] %vm467_vm3, %v1892_v27  ;;  %3060 = vmatmul.mubr.msk.f32.vlgmr.msra.gmra.mrb[26].mxu1 %vm467_vm3, %v1892_v27  ;;  %v2129_v27 = vmax.f32 %v2121_v24, 0.0 }
0x1427   :  { %3237 = vmatpush3.bf16.msra.mxu1 %v3234_v4 }
0x1429   :  { %v1887_v29 = vpop.permute.xlu1 %1886 }
0x142a   :  { %1889 = vst.msk [vmem:[#allocation2 + $0x30] sm:$0xff] %vm467_vm3, %v1887_v29  ;;  %3049 = vmatmul.mubr.msk.f32.vlgmr.msra.gmra.mrb[18].mxu0 %vm467_vm3, %v1887_v29  ;;  %v2122_v29 = vld [vmem:[#allocation3 + $0x38] sm:$0xff] }
0x142b   :  { %3221 = vmatpush3.bf16.msra.mxu0 %v3218_v16 }
0x142c   :  { %3223 = vmatprep.subr.bf16.mxu0 %v3222_v0 }
0x142d   :  { %v2116_v6 = vld [vmem:[#allocation3 + $0x8] sm:$0xff] }
0x142f   :  { %3225 = vmatpush3.bf16.msra.mxu0 %v3222_v0 }
0x1430   :  { %3227 = vmatprep.subr.bf16.mxu0 %v3226_v8 }
0x14f9   :  { %v2036_v30 = vpop.f32.mrb[26].mxu1 }
0x14fa   :  { %v2040_v32 = vadd.f32 %v2036_v30, %v4074_v43  ;;  %v3061_v34 = vpop.f32.mrb[27].mxu1  ;;  %v2099_v30 = vld [vmem:[#allocation2] sm:$0xff] }
0x14fb   :  { %v2107_v34 = vmax.f32 %v2099_v30, 0.0 }
0x14fc   :  { %3384 = vtanh.f32 %v2040_v32  ;;  %v2689_v40 = vmul.f32 -1.442695, %v2040_v32  ;;  %v2130_v32 = vmax.f32 %v2122_v29, 0.0 }
0x14fd   :  { %v1963_v36 = vpop.f32.mrb[18].mxu0 }
0x14fe   :  { %v1967_v37 = vadd.f32 %v1963_v36, %v4064_v31  ;;  %v3050_v38 = vpop.f32.mrb[19].mxu0  ;;  %v2100_v36 = vld [vmem:[#allocation2 + $0x8] sm:$0xff] }
0x14ff   :  { %v2108_v38 = vmax.f32 %v2100_v36, 0.0 }
0x1500   :  { %3386 = vtanh.f32 %v1967_v37  ;;  %v2688_v26 = vmul.f32 -1.442695, %v1967_v37  ;;  %v2101_v37 = vld [vmem:[#allocation2 + $0x10] sm:$0xff] }
0x1501   :  { %3388 = vpow2.f32 %v2689_v40  ;;  %v2103_v40 = vld [vmem:[#allocation2 + $0x20] sm:$0xff] }
0x1502   :  { %3390 = vpow2.f32 %v2688_v26 }
0x1506   :  { %v3385_v49 = vpop.eup %3384 }
0x1507   :  { %2074 = vrot.lane.b32.xlu0 %v3385_v49, %s3751_s11  ;;  %v2109_v49 = vmax.f32 %v2101_v37, 0.0 }
0x150a   :  { %v3387_v54 = vpop.eup %3386 }
0x150b   :  { %2050 = vrot.lane.b32.xlu1 %v3387_v54, %s3751_s11  ;;  %v3389_v42 = vpop.eup %3388  ;;  %v2102_v54 = vld [vmem:[#allocation2 + $0x18] sm:$0xff] }
0x150c   :  { %v2068_v44 = vadd.f32 1.0, %v3389_v42  ;;  %v3391_v43 = vpop.eup %3390  ;;  %v2110_v26 = vmax.f32 %v2102_v54, 0.0  ;;  %v2111_v42 = vmax.f32 %v2103_v40, 0.0 }
0x150d   :  { %v2044_v45 = vadd.f32 1.0, %v3391_v43  ;;  %v2105_v43 = vld [vmem:[#allocation2 + $0x30] sm:$0xff] }
0x150e   :  { %3392 = vrcp.f32 %v2068_v44  ;;  %v2104_v44 = vld [vmem:[#allocation2 + $0x28] sm:$0xff] }
0x150f   :  { %3394 = vrcp.f32 %v2044_v45  ;;  %v2112_v45 = vmax.f32 %v2104_v44, 0.0 }
0x1518   :  { %v3393_v46 = vpop.eup %3392 }
0x1519   :  { %v3395_v50 = vpop.eup %3394  ;;  %v2072_v53 = vmul.f32 %v3393_v46, %v1878_v14  ;;  %v2124_v14 = vmax.f32 %v2116_v6, 0.0 }
0x151a   :  { %v2048_v58 = vmul.f32 %v3395_v50, %v1854_v17  ;;  %v2118_v17 = vld [vmem:[#allocation3 + $0x18] sm:$0xff] }
0x151b   :  { %v2126_v41 = vmax.f32 %v2118_v17, 0.0 }
0x1579   :  { %v2075_v31 = vpop.permute.xlu0 %2074 }
0x157a   :  { %v2077_v48 = vmul.f32 %v3393_v46, %v2075_v31 }
0x157c   :  { %2079 = vrot.lane.b32.xlu0 %v2077_v48, %s3752_s6 }
0x157d   :  { %v2051_v51 = vpop.permute.xlu1 %2050 }
0x157e   :  { %v2053_v52 = vmul.f32 %v3395_v50, %v2051_v51  ;;  %v2423_v51 = vld [vmem:[#allocation21 + $0x18] sm:$0xff] }
0x1580   :  { %2055 = vrot.lane.b32.xlu1 %v2053_v52, %s3752_s6 }
0x15ee   :  { %v2080_v55 = vpop.permute.xlu0 %2079 }
0x15ef   :  { %v2082_v57 = vadd.f32 %v2080_v55, %v2072_v53  ;;  %v2706_v53 = vld [vmem:[#allocation19] ss:$0 sm:$0xff] }
0x15f1   :  { %3396 = vtanh.f32 %v2082_v57 }
0x15f2   :  { %v2056_v59 = vpop.permute.xlu1 %2055 }
0x15f3   :  { %v2058_v60 = vadd.f32 %v2056_v59, %v2048_v58 }
0x15f5   :  { %3398 = vtanh.f32 %v2058_v60 }
0x15fb   :  { %v3397_v61 = vpop.eup %3396 }
0x15fc   :  { %2085 = vrot.lane.b32.xlu0 %v3397_v61, %s3751_s11 }
0x15ff   :  { %v3399_v33 = vpop.eup %3398 }
0x1600   :  { %2061 = vrot.lane.b32.xlu1 %v3399_v33, %s3751_s11 }
0x166e   :  { %v2086_v1 = vpop.permute.xlu0 %2085 }
0x166f   :  { %v2088_v2 = vmul.f32 %v3393_v46, %v2086_v1  ;;  %v2113_v46 = vmax.f32 %v2105_v43, 0.0 }
0x1671   :  { %2095 = vrot.lane.b32.xlu0 %v2088_v2, %s3752_s6 }
0x1672   :  { %v2062_v23 = vpop.permute.xlu1 %2061 }
0x1673   :  { %v2064_v20 = vmul.f32 %v3395_v50, %v2062_v23  ;;  %v2422_v50 = vld [vmem:[#allocation21 + $0x10] sm:$0xff] }
0x1674   :  { %v3238_v52 = vpack.c.bf16 %v2423_v51, %v2422_v50 }
0x1675   :  { %2090 = vrot.lane.b32.xlu1 %v2064_v20, %s3752_s6 }
0x1676   :  { %3239 = vmatprep.subr.bf16.mxu1 %v3238_v52 }
0x1677   :  { %3241 = vmatpush3.bf16.msra.mxu1 %v3238_v52 }
0x16e3   :  { %v2096_v5 = vpop.permute.xlu0 %2095 }
0x16e4   :  { %2098 = vst.msk [vmem:[#allocation3] sm:$0xff] %vm467_vm3, %v2096_v5 }
0x16e7   :  { %v2091_v35 = vpop.permute.xlu1 %2090 }
0x16e8   :  { %2093 = vst.msk [vmem:[#allocation2 + $0x38] sm:$0xff] %vm467_vm3, %v2091_v35  ;;  %v2707_v35 = vld [vmem:[#allocation22] ss:$0 sm:$0xff] }
0x16eb   :  { %v2115_v10 = vld [vmem:[#allocation3] sm:$0xff] }
0x16ec   :  { %v2123_v12 = vmax.f32 %v2115_v10, 0.0 }
0x16ee   :  { %3070 = vmatprep.mubr.msk.f32.mxu0 %vm467_vm3, %v2123_v12 }
0x16ef   :  { %3071 = vmatmul.mubr.msk.f32.vlgmr.msra.gmra.mrb[20].mxu0 %vm467_vm3, %v2124_v14  ;;  %v2106_v31 = vld [vmem:[#allocation2 + $0x38] sm:$0xff] }
0x16f0   :  { %3073 = vmatprep.mubr.msk.f32.mxu0 %vm467_vm3, %v2125_v56  ;;  %3229 = vmatpush3.bf16.msra.mxu0 %v3226_v8  ;;  %v2114_v48 = vmax.f32 %v2106_v31, 0.0 }
0x16f1   :  { %3231 = vmatprep.subr.bf16.mxu0 %v3230_v15 }
0x16f3   :  { %3074 = vmatmul.mubr.msk.f32.gmra.mrb[22].mxu0 %vm467_vm3, %v2126_v41 }
0x16f4   :  { %3076 = vmatprep.mubr.msk.f32.mxu0 %vm467_vm3, %v2127_v19  ;;  %3233 = vmatpush3.bf16.msra.mxu0 %v3230_v15 }
0x16f7   :  { %3077 = vmatmul.mubr.msk.f32.gmra.mrb[24].mxu0 %vm467_vm3, %v2128_v25 }
0x16f8   :  { %3079 = vmatprep.mubr.msk.f32.mxu0 %vm467_vm3, %v2129_v27 }
0x16fb   :  { %3080 = vmatmul.mubr.msk.f32.gmra.mrb[26].mxu0 %vm467_vm3, %v2130_v32 }
0x16fc   :  { %3090 = vmatprep.mubr.msk.f32.mxu0 %vm467_vm3, %v2107_v34 }
0x16ff   :  { %3091 = vmatmul.mubr.msk.f32.vlgmr.msra.gmra.mrb[20].mxu0 %vm467_vm3, %v2108_v38 }
0x1700   :  { %3093 = vmatprep.mubr.msk.f32.mxu0 %vm467_vm3, %v2109_v49 }
0x1703   :  { %3094 = vmatmul.mubr.msk.f32.gmra.mrb[22].mxu0 %vm467_vm3, %v2110_v26 }
0x1704   :  { %3096 = vmatprep.mubr.msk.f32.mxu0 %vm467_vm3, %v2111_v42 }
0x1707   :  { %3097 = vmatmul.mubr.msk.f32.gmra.mrb[24].mxu0 %vm467_vm3, %v2112_v45 }
0x1708   :  { %3099 = vmatprep.mubr.msk.f32.mxu0 %vm467_vm3, %v2113_v46 }
0x170b   :  { %3100 = vmatmul.mubr.msk.f32.gmra.mrb[26].mxu0 %vm467_vm3, %v2114_v48 }
0x17d2   :  { %v3092_v55 = vpop.f32.mrb[20].mxu0 }
0x17d3   :  { %v2405_v57 = vadd.f32 %v3092_v55, %v2706_v53  ;;  %v2358_v58 = vpop.f32.mrb[21].mxu0 }
0x17d4   :  { %v2404_v59 = vadd.f32 %v2706_v53, %v2358_v58 }
0x17d5   :  { %v2413_v33 = vmax.f32 %v2405_v57, 0.0 }
0x17d6   :  { %v2412_v60 = vmax.f32 %v2404_v59, 0.0  ;;  %v3095_v61 = vpop.f32.mrb[22].mxu0 }
0x17d7   :  { %v2407_v47 = vadd.f32 %v3095_v61, %v2706_v53  ;;  %v2368_v62 = vpop.f32.mrb[23].mxu0 }
0x17d8   :  { %v2406_v16 = vadd.f32 %v2706_v53, %v2368_v62  ;;  %3110 = vmatprep.mubr.msk.f32.mxu1 %vm467_vm3, %v2412_v60 }
0x17d9   :  { %3111 = vmatmul.mubr.msk.f32.vlgmr.msra.gmra.mrb[28].mxu1 %vm467_vm3, %v2413_v33  ;;  %v2415_v0 = vmax.f32 %v2407_v47, 0.0 }
0x17da   :  { %v2414_v63 = vmax.f32 %v2406_v16, 0.0  ;;  %v3098_v28 = vpop.f32.mrb[24].mxu0 }
0x17db   :  { %v2409_v1 = vadd.f32 %v3098_v28, %v2706_v53  ;;  %v2378_v2 = vpop.f32.mrb[25].mxu0 }
0x17dc   :  { %v2408_v13 = vadd.f32 %v2706_v53, %v2378_v2  ;;  %3113 = vmatprep.mubr.msk.f32.mxu1 %vm467_vm3, %v2414_v63 }
0x17dd   :  { %3114 = vmatmul.mubr.msk.f32.gmra.mrb[30].mxu1 %vm467_vm3, %v2415_v0  ;;  %v2417_v23 = vmax.f32 %v2409_v1, 0.0 }
0x17de   :  { %v2416_v22 = vmax.f32 %v2408_v13, 0.0  ;;  %v3101_v8 = vpop.f32.mrb[26].mxu0 }
0x17df   :  { %v2411_v20 = vadd.f32 %v3101_v8, %v2706_v53  ;;  %v2388_v3 = vpop.f32.mrb[27].mxu0 }
0x17e0   :  { %v2410_v39 = vadd.f32 %v2706_v53, %v2388_v3  ;;  %3116 = vmatprep.mubr.msk.f32.mxu1 %vm467_vm3, %v2416_v22 }
0x17e1   :  { %3117 = vmatmul.mubr.msk.f32.gmra.mrb[32].mxu1 %vm467_vm3, %v2417_v23  ;;  %v2419_v5 = vmax.f32 %v2411_v20, 0.0 }
0x17e2   :  { %v2418_v4 = vmax.f32 %v2410_v39, 0.0 }
0x17e4   :  { %3119 = vmatprep.mubr.msk.f32.mxu1 %vm467_vm3, %v2418_v4 }
0x17e5   :  { %3120 = vmatmul.mubr.msk.f32.gmra.mrb[34].mxu1 %vm467_vm3, %v2419_v5 }
0x18ac   :  { %v3112_v6 = vpop.f32.mrb[28].mxu1 }
0x18ad   :  { %v2527_v7 = vadd.f32 %v3112_v6, %v2707_v35  ;;  %v2521_v9 = vpop.f32.mrb[29].mxu1 }
0x18ae   :  { %v2522_v10 = vadd.f32 %v2707_v35, %v2521_v9 }
0x18af   :  { %v2717_v11 = vmul.f32 -1.442695, %v2527_v7 }
0x18b0   :  { %v2716_v12 = vmul.f32 -1.442695, %v2522_v10  ;;  %v3115_v14 = vpop.f32.mrb[30].mxu1 }
0x18b1   :  { %3400 = vpow2.f32 %v2717_v11  ;;  %v2537_v15 = vadd.f32 %v3115_v14, %v2707_v35  ;;  %v2531_v56 = vpop.f32.mrb[31].mxu1 }
0x18b2   :  { %3402 = vpow2.f32 %v2716_v12  ;;  %v2532_v17 = vadd.f32 %v2707_v35, %v2531_v56 }
0x18b3   :  { %v2719_v18 = vmul.f32 -1.442695, %v2537_v15 }
0x18b4   :  { %v2718_v41 = vmul.f32 -1.442695, %v2532_v17  ;;  %v3118_v19 = vpop.f32.mrb[32].mxu1 }
0x18b5   :  { %3404 = vpow2.f32 %v2719_v18  ;;  %v2547_v21 = vadd.f32 %v3118_v19, %v2707_v35  ;;  %v2541_v24 = vpop.f32.mrb[33].mxu1 }
0x18b6   :  { %3406 = vpow2.f32 %v2718_v41  ;;  %v2542_v25 = vadd.f32 %v2707_v35, %v2541_v24 }
0x18b7   :  { %v2721_v27 = vmul.f32 -1.442695, %v2547_v21 }
0x18b8   :  { %v2720_v29 = vmul.f32 -1.442695, %v2542_v25  ;;  %v3121_v30 = vpop.f32.mrb[34].mxu1 }
0x18b9   :  { %3408 = vpow2.f32 %v2721_v27  ;;  %v2557_v32 = vadd.f32 %v3121_v30, %v2707_v35  ;;  %v2551_v34 = vpop.f32.mrb[35].mxu1 }
0x18ba   :  { %3410 = vpow2.f32 %v2720_v29  ;;  %v2552_v36 = vadd.f32 %v2707_v35, %v2551_v34 }
0x18bb   :  { %v3401_v37 = vpop.eup %3400  ;;  %v2723_v38 = vmul.f32 -1.442695, %v2557_v32 }
0x18bc   :  { %v3403_v49 = vpop.eup %3402  ;;  %v2585_v54 = vadd.f32 1.0, %v3401_v37  ;;  %v2722_v40 = vmul.f32 -1.442695, %v2552_v36 }
0x18bd   :  { %v2584_v26 = vadd.f32 1.0, %v3403_v49  ;;  %3412 = vpow2.f32 %v2723_v38 }
0x18be   :  { %3414 = vrcp.f32 %v2585_v54 }
0x18bf   :  { %v3405_v42 = vpop.eup %3404  ;;  %3416 = vrcp.f32 %v2584_v26 }
0x18c0   :  { %v3407_v44 = vpop.eup %3406  ;;  %v2587_v43 = vadd.f32 1.0, %v3405_v42  ;;  %3418 = vpow2.f32 %v2722_v40 }
0x18c1   :  { %v2586_v45 = vadd.f32 1.0, %v3407_v44 }
0x18c2   :  { %3420 = vrcp.f32 %v2587_v43 }
0x18c3   :  { %v3409_v46 = vpop.eup %3408  ;;  %3422 = vrcp.f32 %v2586_v45 }
0x18c4   :  { %v3411_v31 = vpop.eup %3410  ;;  %v2589_v48 = vadd.f32 1.0, %v3409_v46 }
0x18c5   :  { %v2588_v50 = vadd.f32 1.0, %v3411_v31 }
0x18c6   :  { %3424 = vrcp.f32 %v2589_v48 }
0x18c7   :  { %v3413_v51 = vpop.eup %3412  ;;  %3426 = vrcp.f32 %v2588_v50 }
0x18c8   :  { %v3415_v52 = vpop.eup %3414  ;;  %v2591_v53 = vadd.f32 1.0, %v3413_v51 }
0x18c9   :  { %v3417_v55 = vpop.eup %3416  ;;  %2610 = vst.msk [vmem:[#allocation24 + $0x8] sm:$0xff] %vm2608_vm4, %v3415_v52 }
0x18ca   :  { %v3419_v57 = vpop.eup %3418  ;;  %3428 = vrcp.f32 %v2591_v53  ;;  %2609 = vst.msk [vmem:[#allocation24] sm:$0xff] %vm2608_vm4, %v3417_v55 }
0x18cb   :  { %v2590_v58 = vadd.f32 1.0, %v3419_v57 }
0x18cc   :  { %v3421_v59 = vpop.eup %3420 }
0x18cd   :  { %v3423_v60 = vpop.eup %3422  ;;  %3430 = vrcp.f32 %v2590_v58  ;;  %2612 = vst.msk [vmem:[#allocation24 + $0x18] sm:$0xff] %vm2608_vm4, %v3421_v59 }
0x18ce   :  { %2611 = vst.msk [vmem:[#allocation24 + $0x10] sm:$0xff] %vm2608_vm4, %v3423_v60 }
0x18d0   :  { %v3425_v61 = vpop.eup %3424 }
0x18d1   :  { %v3427_v33 = vpop.eup %3426  ;;  %2614 = vst.msk [vmem:[#allocation24 + $0x28] sm:$0xff] %vm2608_vm4, %v3425_v61 }
0x18d2   :  { %2613 = vst.msk [vmem:[#allocation24 + $0x20] sm:$0xff] %vm2608_vm4, %v3427_v33 }
0x18d4   :  { %v3429_v47 = vpop.eup %3428 }
0x18d5   :  { %2616 = vst.msk [vmem:[#allocation24 + $0x38] sm:$0xff] %vm2608_vm4, %v3429_v47 }
0x18d7   :  { %v3431_v62 = vpop.eup %3430 }
0x18d8   :  { %2615 = vst.msk [vmem:[#allocation24 + $0x30] sm:$0xff] %vm2608_vm4, %v3431_v62 }
0x18d9   :  { %3707 = shalt.err (!%p3704_p2)
}
0x18da   :  { %s3708_s13 = scalar_lea.hbm %s4333_s12, 1024 }
0x18db   :  { %p3709_p3 = scmp.ne.s32.totalorder %s4333_s12, %s3708_s13  ;;  %p3712_p4 = scmp.lt.u32.totalorder %s3708_s13, %s4333_s12 }
0x18dd   :  { %p3714_p5 = pnand %p3712_p4, %p3709_p3 }
0x18df   :  { %3717 = shalt.err (!%p3714_p5)
}
0x18e0   :  { %2628 = dma.vmem_to_hbm [thread:$0]  %s2623_s23, 1024, %s4333_s12, [#allocation6], %s3738_s24, %s3738_s24, %s3739_s21  }
0x18e1   :  { %3732 = dma.done.wait [#allocation6], 1024  }
0x18e2   :  { %3733 = vsyncadd [#allocation6], 4294966272 }
0x18e3   :  { %2632 = vsyncpa [#allocation5], 1 }
0x18e4   :  { %2633 = vsyncpa [#allocation8], 1 }
0x18e5   :  { %2634 = vsyncpa [#allocation11], 1 }
0x18e6   :  { %2635 = vsyncpa [#allocation14], 1 }
0x18e7   :  { %2636 = vsyncpa [#allocation17], 1 }
0x18e8   :  { %2637 = vsyncpa [#allocation20], 1 }
0x18e9   :  { %2638 = vsyncpa [#allocation23], 1 }
0x18ea   :  { %2639 = vsyncpa [#allocation6], 1 }

</bundles_post_ra>
